<compile_context>
chip_gen: v7x
topology: tpu7x:2x2x1
jax: 0.10.0
libtpu: 0.0.40
codegen_flags: <defaults>
</compile_context>

<pallas_src>
import math
from functools import partial

import jax
import jax.numpy as jnp
from jax.experimental import pallas as pl
from jax.experimental.pallas import tpu as pltpu

# ---- config (what Partialtime.__init__ derives from dconf/mconf) ----
D_MODEL = 32            # mconf.transformer_dmodel
K = 4                   # mconf.K  (channel-shuffle groups)
NHEAD = 2               # mconf.transformer_nhead
NLAYERS = 2             # mconf.transformer_nlayers
PC = D_MODEL // K       # dim_conv (transformer width)
DIM_UNTOUCHED = D_MODEL - PC
DIM_FF = 2048           # nn.TransformerEncoderLayer default dim_feedforward
HEAD_DIM = PC // NHEAD
LN_EPS = 1e-5           # nn.LayerNorm default
NPV = 8                 # rows in the packed small-param slab (7 used, 1 pad)
FF_CHUNK = 512          # DIM_FF chunk size for the fused/accumulated FFN


def _partialtime_kernel(x_ref, w_attn_ref, w_ffn_ref, p_vec_ref, b1_ref, o_ref, *,
                        nlayers, nhead, head_dim, pc, d_model, k_groups, batch,
                        eps, dim_ff, ff_chunk, npv):
    """Whole Partialtime forward on a (M=S*B, D) token-major tile, fully VMEM-resident."""
    x_full = x_ref[...]                               # (M, D) f32
    m_tok = x_full.shape[0]
    h = x_full[:, :pc]                                # (M, PC) channels through the encoder

    # In-kernel block-diagonal attention mask: rows are laid out r = s*B + b, so a row
    # attends only to rows of its own batch element (r % B == r' % B).
    row = jax.lax.broadcasted_iota(jnp.int32, (m_tok, m_tok), 0)
    col = jax.lax.broadcasted_iota(jnp.int32, (m_tok, m_tok), 1)
    same_batch = (row % batch) == (col % batch)

    scale = 1.0 / math.sqrt(head_dim)

    for l in range(nlayers):                          # static layer loop — weights stay in VMEM
        wa = w_attn_ref[l * pc:(l + 1) * pc, :]       # (PC, 4*PC) = [wq|wk|wv|wo]
        wqkv = wa[:, :3 * pc]
        wo = wa[:, 3 * pc:]
        pv = p_vec_ref[l * npv:(l + 1) * npv, :]      # (NPV, 4*PC) packed small params
        bqkv = pv[0:1, :3 * pc]
        bo, g1, be1 = pv[1:2, :pc], pv[2:3, :pc], pv[3:4, :pc]
        b2, g2, be2 = pv[4:5, :pc], pv[5:6, :pc], pv[6:7, :pc]

        # --- multi-head self-attention: fused QKV projection (one matmul) ---
        qkv = jnp.dot(h, wqkv, preferred_element_type=jnp.float32) + bqkv
        q = qkv[:, :pc]
        k = qkv[:, pc:2 * pc]
        v = qkv[:, 2 * pc:3 * pc]

        heads = []
        for hh in range(nhead):                       # static head loop (nhead=2)
            lo = hh * head_dim
            hi = lo + head_dim
            s = jax.lax.dot_general(q[:, lo:hi], k[:, lo:hi],
                                    (((1,), (1,)), ((), ())),
                                    preferred_element_type=jnp.float32) * scale
            s = jnp.where(same_batch, s, jnp.float32(-1e30))
            s = s - jnp.max(s, axis=-1, keepdims=True)
            p = jnp.exp(s)
            p = p * pl.reciprocal(jnp.sum(p, axis=-1, keepdims=True), approx=True)
            heads.append(jnp.dot(p, v[:, lo:hi], preferred_element_type=jnp.float32))
        attn = jnp.dot(jnp.concatenate(heads, axis=1), wo,
                       preferred_element_type=jnp.float32) + bo

        # --- residual + LayerNorm1 (post-norm) ---
        y = h + attn
        mu = jnp.mean(y, axis=-1, keepdims=True)
        var = jnp.mean((y - mu) ** 2, axis=-1, keepdims=True)
        y = (y - mu) * jax.lax.rsqrt(var + eps) * g1 + be1

        # --- ReLU feed-forward, chunked over DIM_FF (no (M,2048) intermediate fully live) ---
        acc = jnp.zeros((m_tok, pc), jnp.float32)
        for c0 in range(0, dim_ff, ff_chunk):         # static chunk loop
            w1c = w_ffn_ref[l * 2 * pc:l * 2 * pc + pc, c0:c0 + ff_chunk]      # (PC, CH)
            w2c = w_ffn_ref[l * 2 * pc + pc:(l + 1) * 2 * pc, c0:c0 + ff_chunk]  # (PC, CH) = W2^T chunk
            b1c = b1_ref[l:l + 1, c0:c0 + ff_chunk]                            # (1, CH)
            h1c = jnp.maximum(
                jnp.dot(y, w1c, preferred_element_type=jnp.float32) + b1c, 0.0)
            # contract the DIM_FF chunk: (M, CH) x (PC, CH)^T  → (M, PC), accumulate in f32
            acc = acc + jax.lax.dot_general(h1c, w2c, (((1,), (1,)), ((), ())),
                                            preferred_element_type=jnp.float32)
        f = acc + b2

        # --- residual + LayerNorm2 ---
        z = y + f
        mu2 = jnp.mean(z, axis=-1, keepdims=True)
        var2 = jnp.mean((z - mu2) ** 2, axis=-1, keepdims=True)
        h = (z - mu2) * jax.lax.rsqrt(var2 + eps) * g2 + be2

    # --- concat passthrough channels + channel_shuffle(groups=K) via static lane slices ---
    pre = jnp.concatenate([h, x_full[:, pc:]], axis=1)            # (M, D)
    cpg = d_model // k_groups
    cols = []
    for c in range(d_model):                                      # out[:, c] = pre[:, (c%K)*cpg + c//K]
        src = (c % k_groups) * cpg + c // k_groups
        cols.append(pre[:, src:src + 1])
    o_ref[...] = jnp.concatenate(cols, axis=1)


@jax.jit
def partialtime_forward(x, params):
    """x: (S, B, D_MODEL) float32 — same layout as the PyTorch module (seq, batch, channels)."""
    S, B, D = x.shape
    M = S * B
    x2d = x.reshape(M, D)                 # row index = s*B + b (free reshape)

    ops = [x2d, params["w_attn"], params["w_ffn"], params["p_vec"], params["b1"]]

    out2d = pl.pallas_call(
        partial(_partialtime_kernel, nlayers=NLAYERS, nhead=NHEAD, head_dim=HEAD_DIM,
                pc=PC, d_model=D_MODEL, k_groups=K, batch=B, eps=LN_EPS,
                dim_ff=DIM_FF, ff_chunk=FF_CHUNK, npv=NPV),
        out_shape=jax.ShapeDtypeStruct((M, D), jnp.float32),
        in_specs=[pl.BlockSpec(memory_space=pltpu.MemorySpace.VMEM)] * len(ops),
        out_specs=pl.BlockSpec(memory_space=pltpu.MemorySpace.VMEM),
    )(*ops)
    return out2d.reshape(S, B, D)


def init_params(key):
    """Per-layer weights packed into a few lane-dense slabs (few large DMAs per launch)."""
    layer_keys = jax.random.split(key, NLAYERS)
    w_attn_rows, w_ffn_rows, p_vec_rows, b1_rows = [], [], [], []
    for lk in layer_keys:
        ks = jax.random.split(lk, 12)
        n = lambda k, shape: jax.random.normal(k, shape, jnp.float32) * 0.1
        # weights stored pre-transposed (in_features, out_features) for x @ W
        wq, wk, wv, wo = (n(ks[0], (PC, PC)), n(ks[1], (PC, PC)),
                          n(ks[2], (PC, PC)), n(ks[3], (PC, PC)))
        bq, bk, bv, bo = (n(ks[4], (PC,)), n(ks[5], (PC,)),
                          n(ks[6], (PC,)), n(ks[7], (PC,)))
        w1, b1 = n(ks[8], (PC, DIM_FF)), n(ks[9], (DIM_FF,))
        w2t, b2 = n(ks[10], (PC, DIM_FF)), n(ks[11], (PC,))   # w2t = W2^T (lane-dense)
        g1, be1 = jnp.ones((PC,), jnp.float32), jnp.zeros((PC,), jnp.float32)
        g2, be2 = jnp.ones((PC,), jnp.float32), jnp.zeros((PC,), jnp.float32)

        w_attn_rows.append(jnp.concatenate([wq, wk, wv, wo], axis=1))  # (PC, 4*PC)
        w_ffn_rows.append(jnp.concatenate([w1, w2t], axis=0))          # (2*PC, DIM_FF)

        pv = jnp.zeros((NPV, 4 * PC), jnp.float32)
        pv = pv.at[0, :3 * PC].set(jnp.concatenate([bq, bk, bv]))
        pv = pv.at[1, :PC].set(bo)
        pv = pv.at[2, :PC].set(g1)
        pv = pv.at[3, :PC].set(be1)
        pv = pv.at[4, :PC].set(b2)
        pv = pv.at[5, :PC].set(g2)
        pv = pv.at[6, :PC].set(be2)
        p_vec_rows.append(pv)
        b1_rows.append(b1)

    return dict(
        w_attn=jnp.concatenate(w_attn_rows, axis=0),   # (NLAYERS*PC, 4*PC)
        w_ffn=jnp.concatenate(w_ffn_rows, axis=0),     # (NLAYERS*2*PC, DIM_FF)
        p_vec=jnp.concatenate(p_vec_rows, axis=0),     # (NLAYERS*NPV, 4*PC)
        b1=jnp.stack(b1_rows, axis=0),                 # (NLAYERS, DIM_FF)
    )


def _ln_ref(v, g, b):
    mu = jnp.mean(v, axis=-1, keepdims=True)
    var = jnp.mean((v - mu) ** 2, axis=-1, keepdims=True)
    return (v - mu) * jax.lax.rsqrt(var + LN_EPS) * g + b


def reference_forward(x, p):
    """Pure-JAX reference mirroring the PyTorch module (eval mode), reading the packed slabs."""
    S, B, D = x.shape
    hp = jax.lax.Precision.HIGHEST
    scale = 1.0 / math.sqrt(HEAD_DIM)
    x1 = jnp.transpose(x[:, :, :PC], (1, 0, 2))          # (B, S, PC)
    x2 = x[:, :, PC:]
    h = x1
    for l in range(NLAYERS):
        wa = p["w_attn"][l * PC:(l + 1) * PC]
        wqkv, wo = wa[:, :3 * PC], wa[:, 3 * PC:]
        pv = p["p_vec"][l * NPV:(l + 1) * NPV]
        bqkv = pv[0, :3 * PC]
        bo, g1, be1 = pv[1, :PC], pv[2, :PC], pv[3, :PC]
        b2, g2, be2 = pv[4, :PC], pv[5, :PC], pv[6, :PC]
        w1 = p["w_ffn"][l * 2 * PC:l * 2 * PC + PC]
        w2t = p["w_ffn"][l * 2 * PC + PC:(l + 1) * 2 * PC]
        b1 = p["b1"][l]

        qkv = jnp.einsum("bsd,de->bse", h, wqkv, precision=hp) + bqkv
        q, k, v = qkv[..., :PC], qkv[..., PC:2 * PC], qkv[..., 2 * PC:]
        heads = []
        for hh in range(NHEAD):
            lo, hi = hh * HEAD_DIM, (hh + 1) * HEAD_DIM
            s = jnp.einsum("bqd,bkd->bqk", q[..., lo:hi], k[..., lo:hi], precision=hp) * scale
            pm = jax.nn.softmax(s, axis=-1)
            heads.append(jnp.einsum("bqk,bkd->bqd", pm, v[..., lo:hi], precision=hp))
        attn = jnp.einsum("bsd,de->bse", jnp.concatenate(heads, axis=-1), wo,
                          precision=hp) + bo
        y = _ln_ref(h + attn, g1, be1)
        h1 = jnp.maximum(jnp.einsum("bsd,df->bsf", y, w1, precision=hp) + b1, 0.0)
        f = jnp.einsum("bsf,df->bsd", h1, w2t, precision=hp) + b2
        h = _ln_ref(y + f, g2, be2)
    x1_out = jnp.transpose(h, (1, 0, 2))                  # (S, B, PC)
    out = jnp.concatenate([x1_out, x2], axis=2)
    # channel_shuffle (3-D branch)
    out = out.reshape(S, B, K, D // K)
    out = jnp.transpose(out, (0, 1, 3, 2)).reshape(S, B, D)
    return out


if __name__ == "__main__":
    S, B = 8, 2
    key = jax.random.PRNGKey(0)
    kx, kp = jax.random.split(key)
    x = jax.random.normal(kx, (S, B, D_MODEL), jnp.float32)
    params = init_params(kp)

    out = jax.block_until_ready(partialtime_forward(x, params))
    assert out.shape == (S, B, D_MODEL), out.shape
    assert out.dtype == jnp.float32
    assert bool(jnp.all(jnp.isfinite(out)))

    ref = jax.block_until_ready(reference_forward(x, params))
    max_err = float(jnp.max(jnp.abs(out - ref)))
    assert max_err < 3e-2, f"max abs err vs reference: {max_err}"

    print("KERNEL_OK")
</pallas_src>

<mosaic_0001>
module attributes {stable_mosaic.version = 11 : i64} {
  func.func @_partialtime_kernel(%arg0: memref<16x32xf32, #tpu.memory_space<vmem>>, %arg1: memref<16x32xf32, #tpu.memory_space<vmem>>, %arg2: memref<32x2048xf32, #tpu.memory_space<vmem>>, %arg3: memref<16x32xf32, #tpu.memory_space<vmem>>, %arg4: memref<2x2048xf32, #tpu.memory_space<vmem>>, %arg5: memref<16x32xf32, #tpu.memory_space<vmem>>) attributes {dimension_semantics = [], scalar_prefetch = 0 : i64, scratch_operands = 0 : i64, tpu.core_type = #tpu.core_type<tc>} {
    %c0 = arith.constant 0 : index
    %c0_0 = arith.constant 0 : index
    %0 = vector.load %arg0[%c0, %c0_0] : memref<16x32xf32, #tpu.memory_space<vmem>>, vector<16x32xf32>
    %1 = vector.extract_strided_slice %0 {offsets = [0, 0], sizes = [16, 8], strides = [1, 1]} : vector<16x32xf32> to vector<16x8xf32>
    %2 = tpu.iota {dimensions = array<i32: 0>} : vector<16x16xi32>
    %3 = tpu.iota {dimensions = array<i32: 1>} : vector<16x16xi32>
    %c2_i32 = arith.constant 2 : i32
    %c0_i32 = arith.constant 0 : i32
    %4 = arith.cmpi eq, %c2_i32, %c0_i32 : i32
    %c1_i32 = arith.constant 1 : i32
    %5 = arith.select %4, %c1_i32, %c2_i32 : i32
    %6 = vector.broadcast %5 : i32 to vector<16x16xi32>
    %7 = arith.remsi %2, %6 : vector<16x16xi32>
    %c0_i32_1 = arith.constant 0 : i32
    %8 = vector.broadcast %c0_i32_1 : i32 to vector<16x16xi32>
    %9 = arith.cmpi ne, %7, %8 : vector<16x16xi32>
    %c0_i32_2 = arith.constant 0 : i32
    %10 = vector.broadcast %c0_i32_2 : i32 to vector<16x16xi32>
    %11 = arith.cmpi slt, %7, %10 : vector<16x16xi32>
    %c0_i32_3 = arith.constant 0 : i32
    %12 = arith.cmpi slt, %5, %c0_i32_3 : i32
    %13 = vector.broadcast %12 : i1 to vector<16x16xi1>
    %14 = vector.broadcast %13 : vector<16x16xi1> to vector<16x16xi1>
    %15 = arith.xori %11, %14 : vector<16x16xi1>
    %16 = arith.andi %15, %9 : vector<16x16xi1>
    %17 = vector.broadcast %5 : i32 to vector<16x16xi32>
    %18 = arith.addi %7, %17 : vector<16x16xi32>
    %19 = arith.select %16, %18, %7 : vector<16x16xi1>, vector<16x16xi32>
    %c2_i32_4 = arith.constant 2 : i32
    %c0_i32_5 = arith.constant 0 : i32
    %20 = arith.cmpi eq, %c2_i32_4, %c0_i32_5 : i32
    %c1_i32_6 = arith.constant 1 : i32
    %21 = arith.select %20, %c1_i32_6, %c2_i32_4 : i32
    %22 = vector.broadcast %21 : i32 to vector<16x16xi32>
    %23 = arith.remsi %3, %22 : vector<16x16xi32>
    %c0_i32_7 = arith.constant 0 : i32
    %24 = vector.broadcast %c0_i32_7 : i32 to vector<16x16xi32>
    %25 = arith.cmpi ne, %23, %24 : vector<16x16xi32>
    %c0_i32_8 = arith.constant 0 : i32
    %26 = vector.broadcast %c0_i32_8 : i32 to vector<16x16xi32>
    %27 = arith.cmpi slt, %23, %26 : vector<16x16xi32>
    %c0_i32_9 = arith.constant 0 : i32
    %28 = arith.cmpi slt, %21, %c0_i32_9 : i32
    %29 = vector.broadcast %28 : i1 to vector<16x16xi1>
    %30 = vector.broadcast %29 : vector<16x16xi1> to vector<16x16xi1>
    %31 = arith.xori %27, %30 : vector<16x16xi1>
    %32 = arith.andi %31, %25 : vector<16x16xi1>
    %33 = vector.broadcast %21 : i32 to vector<16x16xi32>
    %34 = arith.addi %23, %33 : vector<16x16xi32>
    %35 = arith.select %32, %34, %23 : vector<16x16xi1>, vector<16x16xi32>
    %36 = arith.cmpi eq, %19, %35 : vector<16x16xi32>
    %c0_10 = arith.constant 0 : index
    %c0_11 = arith.constant 0 : index
    %37 = vector.load %arg1[%c0_10, %c0_11] : memref<16x32xf32, #tpu.memory_space<vmem>>, vector<8x32xf32>
    %38 = vector.extract_strided_slice %37 {offsets = [0, 0], sizes = [8, 24], strides = [1, 1]} : vector<8x32xf32> to vector<8x24xf32>
    %39 = vector.extract_strided_slice %37 {offsets = [0, 24], sizes = [8, 8], strides = [1, 1]} : vector<8x32xf32> to vector<8x8xf32>
    %c0_12 = arith.constant 0 : index
    %c0_13 = arith.constant 0 : index
    %40 = vector.load %arg3[%c0_12, %c0_13] : memref<16x32xf32, #tpu.memory_space<vmem>>, vector<8x32xf32>
    %41 = vector.extract_strided_slice %40 {offsets = [0, 0], sizes = [1, 24], strides = [1, 1]} : vector<8x32xf32> to vector<1x24xf32>
    %42 = vector.extract_strided_slice %40 {offsets = [1, 0], sizes = [1, 8], strides = [1, 1]} : vector<8x32xf32> to vector<1x8xf32>
    %43 = vector.extract_strided_slice %40 {offsets = [2, 0], sizes = [1, 8], strides = [1, 1]} : vector<8x32xf32> to vector<1x8xf32>
    %44 = vector.extract_strided_slice %40 {offsets = [3, 0], sizes = [1, 8], strides = [1, 1]} : vector<8x32xf32> to vector<1x8xf32>
    %45 = vector.extract_strided_slice %40 {offsets = [4, 0], sizes = [1, 8], strides = [1, 1]} : vector<8x32xf32> to vector<1x8xf32>
    %46 = vector.extract_strided_slice %40 {offsets = [5, 0], sizes = [1, 8], strides = [1, 1]} : vector<8x32xf32> to vector<1x8xf32>
    %47 = vector.extract_strided_slice %40 {offsets = [6, 0], sizes = [1, 8], strides = [1, 1]} : vector<8x32xf32> to vector<1x8xf32>
    %cst = arith.constant dense<0.000000e+00> : vector<16x24xf32>
    %48 = tpu.matmul %1, %38, %cst {dimension_numbers = #tpu.dot_dimension_numbers<[1], [0], [0], [1], [0, 0, 1, 1], [], []>} : vector<16x8xf32>, vector<8x24xf32>, vector<16x24xf32> -> vector<16x24xf32>
    %49 = vector.broadcast %41 : vector<1x24xf32> to vector<16x24xf32>
    %50 = arith.addf %48, %49 : vector<16x24xf32>
    %51 = vector.extract_strided_slice %50 {offsets = [0, 0], sizes = [16, 8], strides = [1, 1]} : vector<16x24xf32> to vector<16x8xf32>
    %52 = vector.extract_strided_slice %50 {offsets = [0, 8], sizes = [16, 8], strides = [1, 1]} : vector<16x24xf32> to vector<16x8xf32>
    %53 = vector.extract_strided_slice %50 {offsets = [0, 16], sizes = [16, 8], strides = [1, 1]} : vector<16x24xf32> to vector<16x8xf32>
    %54 = vector.extract_strided_slice %51 {offsets = [0, 0], sizes = [16, 4], strides = [1, 1]} : vector<16x8xf32> to vector<16x4xf32>
    %55 = vector.extract_strided_slice %52 {offsets = [0, 0], sizes = [16, 4], strides = [1, 1]} : vector<16x8xf32> to vector<16x4xf32>
    %cst_14 = arith.constant dense<0.000000e+00> : vector<16x16xf32>
    %56 = tpu.matmul %54, %55, %cst_14 {dimension_numbers = #tpu.dot_dimension_numbers<[1], [1], [0], [0], [0, 0, 1, 0], [], []>} : vector<16x4xf32>, vector<16x4xf32>, vector<16x16xf32> -> vector<16x16xf32>
    %cst_15 = arith.constant 5.000000e-01 : f32
    %57 = vector.broadcast %cst_15 : f32 to vector<16x16xf32>
    %58 = arith.mulf %56, %57 : vector<16x16xf32>
    %cst_16 = arith.constant -1.000000e+30 : f32
    %59 = vector.broadcast %cst_16 : f32 to vector<16x16xf32>
    %60 = arith.select %36, %58, %59 : vector<16x16xi1>, vector<16x16xf32>
    %cst_17 = arith.constant dense<0xFF800000> : vector<16xf32>
    %61 = vector.multi_reduction <maximumf>, %60, %cst_17 [1] : vector<16x16xf32> to vector<16xf32>
    %62 = vector.shape_cast %61 : vector<16xf32> to vector<16x1xf32>
    %63 = vector.broadcast %62 : vector<16x1xf32> to vector<16x16xf32>
    %64 = arith.subf %60, %63 : vector<16x16xf32>
    %65 = math.exp %64 : vector<16x16xf32>
    %cst_18 = arith.constant dense<0.000000e+00> : vector<16xf32>
    %66 = vector.multi_reduction <add>, %65, %cst_18 [1] : vector<16x16xf32> to vector<16xf32>
    %67 = vector.shape_cast %66 : vector<16xf32> to vector<16x1xf32>
    %68 = tpu.reciprocal %67 {approx = true} : vector<16x1xf32> -> vector<16x1xf32>
    %69 = vector.broadcast %68 : vector<16x1xf32> to vector<16x16xf32>
    %70 = arith.mulf %65, %69 : vector<16x16xf32>
    %71 = vector.extract_strided_slice %53 {offsets = [0, 0], sizes = [16, 4], strides = [1, 1]} : vector<16x8xf32> to vector<16x4xf32>
    %cst_19 = arith.constant dense<0.000000e+00> : vector<16x4xf32>
    %72 = tpu.matmul %70, %71, %cst_19 {dimension_numbers = #tpu.dot_dimension_numbers<[1], [0], [0], [1], [0, 0, 1, 1], [], []>} : vector<16x16xf32>, vector<16x4xf32>, vector<16x4xf32> -> vector<16x4xf32>
    %73 = vector.extract_strided_slice %51 {offsets = [0, 4], sizes = [16, 4], strides = [1, 1]} : vector<16x8xf32> to vector<16x4xf32>
    %74 = vector.extract_strided_slice %52 {offsets = [0, 4], sizes = [16, 4], strides = [1, 1]} : vector<16x8xf32> to vector<16x4xf32>
    %cst_20 = arith.constant dense<0.000000e+00> : vector<16x16xf32>
    %75 = tpu.matmul %73, %74, %cst_20 {dimension_numbers = #tpu.dot_dimension_numbers<[1], [1], [0], [0], [0, 0, 1, 0], [], []>} : vector<16x4xf32>, vector<16x4xf32>, vector<16x16xf32> -> vector<16x16xf32>
    %cst_21 = arith.constant 5.000000e-01 : f32
    %76 = vector.broadcast %cst_21 : f32 to vector<16x16xf32>
    %77 = arith.mulf %75, %76 : vector<16x16xf32>
    %cst_22 = arith.constant -1.000000e+30 : f32
    %78 = vector.broadcast %cst_22 : f32 to vector<16x16xf32>
    %79 = arith.select %36, %77, %78 : vector<16x16xi1>, vector<16x16xf32>
    %cst_23 = arith.constant dense<0xFF800000> : vector<16xf32>
    %80 = vector.multi_reduction <maximumf>, %79, %cst_23 [1] : vector<16x16xf32> to vector<16xf32>
    %81 = vector.shape_cast %80 : vector<16xf32> to vector<16x1xf32>
    %82 = vector.broadcast %81 : vector<16x1xf32> to vector<16x16xf32>
    %83 = arith.subf %79, %82 : vector<16x16xf32>
    %84 = math.exp %83 : vector<16x16xf32>
    %cst_24 = arith.constant dense<0.000000e+00> : vector<16xf32>
    %85 = vector.multi_reduction <add>, %84, %cst_24 [1] : vector<16x16xf32> to vector<16xf32>
    %86 = vector.shape_cast %85 : vector<16xf32> to vector<16x1xf32>
    %87 = tpu.reciprocal %86 {approx = true} : vector<16x1xf32> -> vector<16x1xf32>
    %88 = vector.broadcast %87 : vector<16x1xf32> to vector<16x16xf32>
    %89 = arith.mulf %84, %88 : vector<16x16xf32>
    %90 = vector.extract_strided_slice %53 {offsets = [0, 4], sizes = [16, 4], strides = [1, 1]} : vector<16x8xf32> to vector<16x4xf32>
    %cst_25 = arith.constant dense<0.000000e+00> : vector<16x4xf32>
    %91 = tpu.matmul %89, %90, %cst_25 {dimension_numbers = #tpu.dot_dimension_numbers<[1], [0], [0], [1], [0, 0, 1, 1], [], []>} : vector<16x16xf32>, vector<16x4xf32>, vector<16x4xf32> -> vector<16x4xf32>
    %92 = tpu.concatenate %72, %91 in 1 : vector<16x4xf32>, vector<16x4xf32> -> vector<16x8xf32>
    %cst_26 = arith.constant dense<0.000000e+00> : vector<16x8xf32>
    %93 = tpu.matmul %92, %39, %cst_26 {dimension_numbers = #tpu.dot_dimension_numbers<[1], [0], [0], [1], [0, 0, 1, 1], [], []>} : vector<16x8xf32>, vector<8x8xf32>, vector<16x8xf32> -> vector<16x8xf32>
    %94 = vector.broadcast %42 : vector<1x8xf32> to vector<16x8xf32>
    %95 = arith.addf %93, %94 : vector<16x8xf32>
    %96 = arith.addf %1, %95 : vector<16x8xf32>
    %cst_27 = arith.constant dense<0.000000e+00> : vector<16xf32>
    %97 = vector.multi_reduction <add>, %96, %cst_27 [1] : vector<16x8xf32> to vector<16xf32>
    %98 = vector.shape_cast %97 : vector<16xf32> to vector<16x1xf32>
    %cst_28 = arith.constant 8.000000e+00 : f32
    %99 = vector.broadcast %cst_28 : f32 to vector<16x1xf32>
    %100 = arith.divf %98, %99 : vector<16x1xf32>
    %101 = vector.broadcast %100 : vector<16x1xf32> to vector<16x8xf32>
    %102 = arith.subf %96, %101 : vector<16x8xf32>
    %103 = arith.mulf %102, %102 : vector<16x8xf32>
    %cst_29 = arith.constant dense<0.000000e+00> : vector<16xf32>
    %104 = vector.multi_reduction <add>, %103, %cst_29 [1] : vector<16x8xf32> to vector<16xf32>
    %105 = vector.shape_cast %104 : vector<16xf32> to vector<16x1xf32>
    %cst_30 = arith.constant 8.000000e+00 : f32
    %106 = vector.broadcast %cst_30 : f32 to vector<16x1xf32>
    %107 = arith.divf %105, %106 : vector<16x1xf32>
    %108 = vector.broadcast %100 : vector<16x1xf32> to vector<16x8xf32>
    %109 = arith.subf %96, %108 : vector<16x8xf32>
    %cst_31 = arith.constant 9.99999974E-6 : f32
    %110 = vector.broadcast %cst_31 : f32 to vector<16x1xf32>
    %111 = arith.addf %107, %110 : vector<16x1xf32>
    %112 = math.rsqrt %111 : vector<16x1xf32>
    %113 = vector.broadcast %112 : vector<16x1xf32> to vector<16x8xf32>
    %114 = arith.mulf %109, %113 : vector<16x8xf32>
    %115 = vector.broadcast %43 : vector<1x8xf32> to vector<16x8xf32>
    %116 = arith.mulf %114, %115 : vector<16x8xf32>
    %117 = vector.broadcast %44 : vector<1x8xf32> to vector<16x8xf32>
    %118 = arith.addf %116, %117 : vector<16x8xf32>
    %cst_32 = arith.constant 0.000000e+00 : f32
    %119 = vector.broadcast %cst_32 : f32 to vector<16x8xf32>
    %c0_33 = arith.constant 0 : index
    %c0_34 = arith.constant 0 : index
    %120 = vector.load %arg2[%c0_33, %c0_34] : memref<32x2048xf32, #tpu.memory_space<vmem>>, vector<8x512xf32>
    %c8 = arith.constant 8 : index
    %c0_35 = arith.constant 0 : index
    %121 = vector.load %arg2[%c8, %c0_35] : memref<32x2048xf32, #tpu.memory_space<vmem>>, vector<8x512xf32>
    %c0_36 = arith.constant 0 : index
    %c0_37 = arith.constant 0 : index
    %122 = vector.load %arg4[%c0_36, %c0_37] : memref<2x2048xf32, #tpu.memory_space<vmem>>, vector<1x512xf32>
    %cst_38 = arith.constant dense<0.000000e+00> : vector<16x512xf32>
    %123 = tpu.matmul %118, %120, %cst_38 {dimension_numbers = #tpu.dot_dimension_numbers<[1], [0], [0], [1], [0, 0, 1, 1], [], []>} : vector<16x8xf32>, vector<8x512xf32>, vector<16x512xf32> -> vector<16x512xf32>
    %124 = vector.broadcast %122 : vector<1x512xf32> to vector<16x512xf32>
    %125 = arith.addf %123, %124 : vector<16x512xf32>
    %cst_39 = arith.constant 0.000000e+00 : f32
    %126 = vector.broadcast %cst_39 : f32 to vector<16x512xf32>
    %127 = arith.maximumf %125, %126 : vector<16x512xf32>
    %cst_40 = arith.constant dense<0.000000e+00> : vector<16x8xf32>
    %128 = tpu.matmul %127, %121, %cst_40 {dimension_numbers = #tpu.dot_dimension_numbers<[1], [1], [0], [0], [0, 0, 1, 0], [], []>} : vector<16x512xf32>, vector<8x512xf32>, vector<16x8xf32> -> vector<16x8xf32>
    %129 = arith.addf %119, %128 : vector<16x8xf32>
    %c0_41 = arith.constant 0 : index
    %c512 = arith.constant 512 : index
    %130 = vector.load %arg2[%c0_41, %c512] : memref<32x2048xf32, #tpu.memory_space<vmem>>, vector<8x512xf32>
    %c8_42 = arith.constant 8 : index
    %c512_43 = arith.constant 512 : index
    %131 = vector.load %arg2[%c8_42, %c512_43] : memref<32x2048xf32, #tpu.memory_space<vmem>>, vector<8x512xf32>
    %c0_44 = arith.constant 0 : index
    %c512_45 = arith.constant 512 : index
    %132 = vector.load %arg4[%c0_44, %c512_45] : memref<2x2048xf32, #tpu.memory_space<vmem>>, vector<1x512xf32>
    %cst_46 = arith.constant dense<0.000000e+00> : vector<16x512xf32>
    %133 = tpu.matmul %118, %130, %cst_46 {dimension_numbers = #tpu.dot_dimension_numbers<[1], [0], [0], [1], [0, 0, 1, 1], [], []>} : vector<16x8xf32>, vector<8x512xf32>, vector<16x512xf32> -> vector<16x512xf32>
    %134 = vector.broadcast %132 : vector<1x512xf32> to vector<16x512xf32>
    %135 = arith.addf %133, %134 : vector<16x512xf32>
    %cst_47 = arith.constant 0.000000e+00 : f32
    %136 = vector.broadcast %cst_47 : f32 to vector<16x512xf32>
    %137 = arith.maximumf %135, %136 : vector<16x512xf32>
    %cst_48 = arith.constant dense<0.000000e+00> : vector<16x8xf32>
    %138 = tpu.matmul %137, %131, %cst_48 {dimension_numbers = #tpu.dot_dimension_numbers<[1], [1], [0], [0], [0, 0, 1, 0], [], []>} : vector<16x512xf32>, vector<8x512xf32>, vector<16x8xf32> -> vector<16x8xf32>
    %139 = arith.addf %129, %138 : vector<16x8xf32>
    %c0_49 = arith.constant 0 : index
    %c1024 = arith.constant 1024 : index
    %140 = vector.load %arg2[%c0_49, %c1024] : memref<32x2048xf32, #tpu.memory_space<vmem>>, vector<8x512xf32>
    %c8_50 = arith.constant 8 : index
    %c1024_51 = arith.constant 1024 : index
    %141 = vector.load %arg2[%c8_50, %c1024_51] : memref<32x2048xf32, #tpu.memory_space<vmem>>, vector<8x512xf32>
    %c0_52 = arith.constant 0 : index
    %c1024_53 = arith.constant 1024 : index
    %142 = vector.load %arg4[%c0_52, %c1024_53] : memref<2x2048xf32, #tpu.memory_space<vmem>>, vector<1x512xf32>
    %cst_54 = arith.constant dense<0.000000e+00> : vector<16x512xf32>
    %143 = tpu.matmul %118, %140, %cst_54 {dimension_numbers = #tpu.dot_dimension_numbers<[1], [0], [0], [1], [0, 0, 1, 1], [], []>} : vector<16x8xf32>, vector<8x512xf32>, vector<16x512xf32> -> vector<16x512xf32>
    %144 = vector.broadcast %142 : vector<1x512xf32> to vector<16x512xf32>
    %145 = arith.addf %143, %144 : vector<16x512xf32>
    %cst_55 = arith.constant 0.000000e+00 : f32
    %146 = vector.broadcast %cst_55 : f32 to vector<16x512xf32>
    %147 = arith.maximumf %145, %146 : vector<16x512xf32>
    %cst_56 = arith.constant dense<0.000000e+00> : vector<16x8xf32>
    %148 = tpu.matmul %147, %141, %cst_56 {dimension_numbers = #tpu.dot_dimension_numbers<[1], [1], [0], [0], [0, 0, 1, 0], [], []>} : vector<16x512xf32>, vector<8x512xf32>, vector<16x8xf32> -> vector<16x8xf32>
    %149 = arith.addf %139, %148 : vector<16x8xf32>
    %c0_57 = arith.constant 0 : index
    %c1536 = arith.constant 1536 : index
    %150 = vector.load %arg2[%c0_57, %c1536] : memref<32x2048xf32, #tpu.memory_space<vmem>>, vector<8x512xf32>
    %c8_58 = arith.constant 8 : index
    %c1536_59 = arith.constant 1536 : index
    %151 = vector.load %arg2[%c8_58, %c1536_59] : memref<32x2048xf32, #tpu.memory_space<vmem>>, vector<8x512xf32>
    %c0_60 = arith.constant 0 : index
    %c1536_61 = arith.constant 1536 : index
    %152 = vector.load %arg4[%c0_60, %c1536_61] : memref<2x2048xf32, #tpu.memory_space<vmem>>, vector<1x512xf32>
    %cst_62 = arith.constant dense<0.000000e+00> : vector<16x512xf32>
    %153 = tpu.matmul %118, %150, %cst_62 {dimension_numbers = #tpu.dot_dimension_numbers<[1], [0], [0], [1], [0, 0, 1, 1], [], []>} : vector<16x8xf32>, vector<8x512xf32>, vector<16x512xf32> -> vector<16x512xf32>
    %154 = vector.broadcast %152 : vector<1x512xf32> to vector<16x512xf32>
    %155 = arith.addf %153, %154 : vector<16x512xf32>
    %cst_63 = arith.constant 0.000000e+00 : f32
    %156 = vector.broadcast %cst_63 : f32 to vector<16x512xf32>
    %157 = arith.maximumf %155, %156 : vector<16x512xf32>
    %cst_64 = arith.constant dense<0.000000e+00> : vector<16x8xf32>
    %158 = tpu.matmul %157, %151, %cst_64 {dimension_numbers = #tpu.dot_dimension_numbers<[1], [1], [0], [0], [0, 0, 1, 0], [], []>} : vector<16x512xf32>, vector<8x512xf32>, vector<16x8xf32> -> vector<16x8xf32>
    %159 = arith.addf %149, %158 : vector<16x8xf32>
    %160 = vector.broadcast %45 : vector<1x8xf32> to vector<16x8xf32>
    %161 = arith.addf %159, %160 : vector<16x8xf32>
    %162 = arith.addf %118, %161 : vector<16x8xf32>
    %cst_65 = arith.constant dense<0.000000e+00> : vector<16xf32>
    %163 = vector.multi_reduction <add>, %162, %cst_65 [1] : vector<16x8xf32> to vector<16xf32>
    %164 = vector.shape_cast %163 : vector<16xf32> to vector<16x1xf32>
    %cst_66 = arith.constant 8.000000e+00 : f32
    %165 = vector.broadcast %cst_66 : f32 to vector<16x1xf32>
    %166 = arith.divf %164, %165 : vector<16x1xf32>
    %167 = vector.broadcast %166 : vector<16x1xf32> to vector<16x8xf32>
    %168 = arith.subf %162, %167 : vector<16x8xf32>
    %169 = arith.mulf %168, %168 : vector<16x8xf32>
    %cst_67 = arith.constant dense<0.000000e+00> : vector<16xf32>
    %170 = vector.multi_reduction <add>, %169, %cst_67 [1] : vector<16x8xf32> to vector<16xf32>
    %171 = vector.shape_cast %170 : vector<16xf32> to vector<16x1xf32>
    %cst_68 = arith.constant 8.000000e+00 : f32
    %172 = vector.broadcast %cst_68 : f32 to vector<16x1xf32>
    %173 = arith.divf %171, %172 : vector<16x1xf32>
    %174 = vector.broadcast %166 : vector<16x1xf32> to vector<16x8xf32>
    %175 = arith.subf %162, %174 : vector<16x8xf32>
    %cst_69 = arith.constant 9.99999974E-6 : f32
    %176 = vector.broadcast %cst_69 : f32 to vector<16x1xf32>
    %177 = arith.addf %173, %176 : vector<16x1xf32>
    %178 = math.rsqrt %177 : vector<16x1xf32>
    %179 = vector.broadcast %178 : vector<16x1xf32> to vector<16x8xf32>
    %180 = arith.mulf %175, %179 : vector<16x8xf32>
    %181 = vector.broadcast %46 : vector<1x8xf32> to vector<16x8xf32>
    %182 = arith.mulf %180, %181 : vector<16x8xf32>
    %183 = vector.broadcast %47 : vector<1x8xf32> to vector<16x8xf32>
    %184 = arith.addf %182, %183 : vector<16x8xf32>
    %c8_70 = arith.constant 8 : index
    %c0_71 = arith.constant 0 : index
    %185 = vector.load %arg1[%c8_70, %c0_71] : memref<16x32xf32, #tpu.memory_space<vmem>>, vector<8x32xf32>
    %186 = vector.extract_strided_slice %185 {offsets = [0, 0], sizes = [8, 24], strides = [1, 1]} : vector<8x32xf32> to vector<8x24xf32>
    %187 = vector.extract_strided_slice %185 {offsets = [0, 24], sizes = [8, 8], strides = [1, 1]} : vector<8x32xf32> to vector<8x8xf32>
    %c8_72 = arith.constant 8 : index
    %c0_73 = arith.constant 0 : index
    %188 = vector.load %arg3[%c8_72, %c0_73] : memref<16x32xf32, #tpu.memory_space<vmem>>, vector<8x32xf32>
    %189 = vector.extract_strided_slice %188 {offsets = [0, 0], sizes = [1, 24], strides = [1, 1]} : vector<8x32xf32> to vector<1x24xf32>
    %190 = vector.extract_strided_slice %188 {offsets = [1, 0], sizes = [1, 8], strides = [1, 1]} : vector<8x32xf32> to vector<1x8xf32>
    %191 = vector.extract_strided_slice %188 {offsets = [2, 0], sizes = [1, 8], strides = [1, 1]} : vector<8x32xf32> to vector<1x8xf32>
    %192 = vector.extract_strided_slice %188 {offsets = [3, 0], sizes = [1, 8], strides = [1, 1]} : vector<8x32xf32> to vector<1x8xf32>
    %193 = vector.extract_strided_slice %188 {offsets = [4, 0], sizes = [1, 8], strides = [1, 1]} : vector<8x32xf32> to vector<1x8xf32>
    %194 = vector.extract_strided_slice %188 {offsets = [5, 0], sizes = [1, 8], strides = [1, 1]} : vector<8x32xf32> to vector<1x8xf32>
    %195 = vector.extract_strided_slice %188 {offsets = [6, 0], sizes = [1, 8], strides = [1, 1]} : vector<8x32xf32> to vector<1x8xf32>
    %cst_74 = arith.constant dense<0.000000e+00> : vector<16x24xf32>
    %196 = tpu.matmul %184, %186, %cst_74 {dimension_numbers = #tpu.dot_dimension_numbers<[1], [0], [0], [1], [0, 0, 1, 1], [], []>} : vector<16x8xf32>, vector<8x24xf32>, vector<16x24xf32> -> vector<16x24xf32>
    %197 = vector.broadcast %189 : vector<1x24xf32> to vector<16x24xf32>
    %198 = arith.addf %196, %197 : vector<16x24xf32>
    %199 = vector.extract_strided_slice %198 {offsets = [0, 0], sizes = [16, 8], strides = [1, 1]} : vector<16x24xf32> to vector<16x8xf32>
    %200 = vector.extract_strided_slice %198 {offsets = [0, 8], sizes = [16, 8], strides = [1, 1]} : vector<16x24xf32> to vector<16x8xf32>
    %201 = vector.extract_strided_slice %198 {offsets = [0, 16], sizes = [16, 8], strides = [1, 1]} : vector<16x24xf32> to vector<16x8xf32>
    %202 = vector.extract_strided_slice %199 {offsets = [0, 0], sizes = [16, 4], strides = [1, 1]} : vector<16x8xf32> to vector<16x4xf32>
    %203 = vector.extract_strided_slice %200 {offsets = [0, 0], sizes = [16, 4], strides = [1, 1]} : vector<16x8xf32> to vector<16x4xf32>
    %cst_75 = arith.constant dense<0.000000e+00> : vector<16x16xf32>
    %204 = tpu.matmul %202, %203, %cst_75 {dimension_numbers = #tpu.dot_dimension_numbers<[1], [1], [0], [0], [0, 0, 1, 0], [], []>} : vector<16x4xf32>, vector<16x4xf32>, vector<16x16xf32> -> vector<16x16xf32>
    %cst_76 = arith.constant 5.000000e-01 : f32
    %205 = vector.broadcast %cst_76 : f32 to vector<16x16xf32>
    %206 = arith.mulf %204, %205 : vector<16x16xf32>
    %cst_77 = arith.constant -1.000000e+30 : f32
    %207 = vector.broadcast %cst_77 : f32 to vector<16x16xf32>
    %208 = arith.select %36, %206, %207 : vector<16x16xi1>, vector<16x16xf32>
    %cst_78 = arith.constant dense<0xFF800000> : vector<16xf32>
    %209 = vector.multi_reduction <maximumf>, %208, %cst_78 [1] : vector<16x16xf32> to vector<16xf32>
    %210 = vector.shape_cast %209 : vector<16xf32> to vector<16x1xf32>
    %211 = vector.broadcast %210 : vector<16x1xf32> to vector<16x16xf32>
    %212 = arith.subf %208, %211 : vector<16x16xf32>
    %213 = math.exp %212 : vector<16x16xf32>
    %cst_79 = arith.constant dense<0.000000e+00> : vector<16xf32>
    %214 = vector.multi_reduction <add>, %213, %cst_79 [1] : vector<16x16xf32> to vector<16xf32>
    %215 = vector.shape_cast %214 : vector<16xf32> to vector<16x1xf32>
    %216 = tpu.reciprocal %215 {approx = true} : vector<16x1xf32> -> vector<16x1xf32>
    %217 = vector.broadcast %216 : vector<16x1xf32> to vector<16x16xf32>
    %218 = arith.mulf %213, %217 : vector<16x16xf32>
    %219 = vector.extract_strided_slice %201 {offsets = [0, 0], sizes = [16, 4], strides = [1, 1]} : vector<16x8xf32> to vector<16x4xf32>
    %cst_80 = arith.constant dense<0.000000e+00> : vector<16x4xf32>
    %220 = tpu.matmul %218, %219, %cst_80 {dimension_numbers = #tpu.dot_dimension_numbers<[1], [0], [0], [1], [0, 0, 1, 1], [], []>} : vector<16x16xf32>, vector<16x4xf32>, vector<16x4xf32> -> vector<16x4xf32>
    %221 = vector.extract_strided_slice %199 {offsets = [0, 4], sizes = [16, 4], strides = [1, 1]} : vector<16x8xf32> to vector<16x4xf32>
    %222 = vector.extract_strided_slice %200 {offsets = [0, 4], sizes = [16, 4], strides = [1, 1]} : vector<16x8xf32> to vector<16x4xf32>
    %cst_81 = arith.constant dense<0.000000e+00> : vector<16x16xf32>
    %223 = tpu.matmul %221, %222, %cst_81 {dimension_numbers = #tpu.dot_dimension_numbers<[1], [1], [0], [0], [0, 0, 1, 0], [], []>} : vector<16x4xf32>, vector<16x4xf32>, vector<16x16xf32> -> vector<16x16xf32>
    %cst_82 = arith.constant 5.000000e-01 : f32
    %224 = vector.broadcast %cst_82 : f32 to vector<16x16xf32>
    %225 = arith.mulf %223, %224 : vector<16x16xf32>
    %cst_83 = arith.constant -1.000000e+30 : f32
    %226 = vector.broadcast %cst_83 : f32 to vector<16x16xf32>
    %227 = arith.select %36, %225, %226 : vector<16x16xi1>, vector<16x16xf32>
    %cst_84 = arith.constant dense<0xFF800000> : vector<16xf32>
    %228 = vector.multi_reduction <maximumf>, %227, %cst_84 [1] : vector<16x16xf32> to vector<16xf32>
    %229 = vector.shape_cast %228 : vector<16xf32> to vector<16x1xf32>
    %230 = vector.broadcast %229 : vector<16x1xf32> to vector<16x16xf32>
    %231 = arith.subf %227, %230 : vector<16x16xf32>
    %232 = math.exp %231 : vector<16x16xf32>
    %cst_85 = arith.constant dense<0.000000e+00> : vector<16xf32>
    %233 = vector.multi_reduction <add>, %232, %cst_85 [1] : vector<16x16xf32> to vector<16xf32>
    %234 = vector.shape_cast %233 : vector<16xf32> to vector<16x1xf32>
    %235 = tpu.reciprocal %234 {approx = true} : vector<16x1xf32> -> vector<16x1xf32>
    %236 = vector.broadcast %235 : vector<16x1xf32> to vector<16x16xf32>
    %237 = arith.mulf %232, %236 : vector<16x16xf32>
    %238 = vector.extract_strided_slice %201 {offsets = [0, 4], sizes = [16, 4], strides = [1, 1]} : vector<16x8xf32> to vector<16x4xf32>
    %cst_86 = arith.constant dense<0.000000e+00> : vector<16x4xf32>
    %239 = tpu.matmul %237, %238, %cst_86 {dimension_numbers = #tpu.dot_dimension_numbers<[1], [0], [0], [1], [0, 0, 1, 1], [], []>} : vector<16x16xf32>, vector<16x4xf32>, vector<16x4xf32> -> vector<16x4xf32>
    %240 = tpu.concatenate %220, %239 in 1 : vector<16x4xf32>, vector<16x4xf32> -> vector<16x8xf32>
    %cst_87 = arith.constant dense<0.000000e+00> : vector<16x8xf32>
    %241 = tpu.matmul %240, %187, %cst_87 {dimension_numbers = #tpu.dot_dimension_numbers<[1], [0], [0], [1], [0, 0, 1, 1], [], []>} : vector<16x8xf32>, vector<8x8xf32>, vector<16x8xf32> -> vector<16x8xf32>
    %242 = vector.broadcast %190 : vector<1x8xf32> to vector<16x8xf32>
    %243 = arith.addf %241, %242 : vector<16x8xf32>
    %244 = arith.addf %184, %243 : vector<16x8xf32>
    %cst_88 = arith.constant dense<0.000000e+00> : vector<16xf32>
    %245 = vector.multi_reduction <add>, %244, %cst_88 [1] : vector<16x8xf32> to vector<16xf32>
    %246 = vector.shape_cast %245 : vector<16xf32> to vector<16x1xf32>
    %cst_89 = arith.constant 8.000000e+00 : f32
    %247 = vector.broadcast %cst_89 : f32 to vector<16x1xf32>
    %248 = arith.divf %246, %247 : vector<16x1xf32>
    %249 = vector.broadcast %248 : vector<16x1xf32> to vector<16x8xf32>
    %250 = arith.subf %244, %249 : vector<16x8xf32>
    %251 = arith.mulf %250, %250 : vector<16x8xf32>
    %cst_90 = arith.constant dense<0.000000e+00> : vector<16xf32>
    %252 = vector.multi_reduction <add>, %251, %cst_90 [1] : vector<16x8xf32> to vector<16xf32>
    %253 = vector.shape_cast %252 : vector<16xf32> to vector<16x1xf32>
    %cst_91 = arith.constant 8.000000e+00 : f32
    %254 = vector.broadcast %cst_91 : f32 to vector<16x1xf32>
    %255 = arith.divf %253, %254 : vector<16x1xf32>
    %256 = vector.broadcast %248 : vector<16x1xf32> to vector<16x8xf32>
    %257 = arith.subf %244, %256 : vector<16x8xf32>
    %cst_92 = arith.constant 9.99999974E-6 : f32
    %258 = vector.broadcast %cst_92 : f32 to vector<16x1xf32>
    %259 = arith.addf %255, %258 : vector<16x1xf32>
    %260 = math.rsqrt %259 : vector<16x1xf32>
    %261 = vector.broadcast %260 : vector<16x1xf32> to vector<16x8xf32>
    %262 = arith.mulf %257, %261 : vector<16x8xf32>
    %263 = vector.broadcast %191 : vector<1x8xf32> to vector<16x8xf32>
    %264 = arith.mulf %262, %263 : vector<16x8xf32>
    %265 = vector.broadcast %192 : vector<1x8xf32> to vector<16x8xf32>
    %266 = arith.addf %264, %265 : vector<16x8xf32>
    %cst_93 = arith.constant 0.000000e+00 : f32
    %267 = vector.broadcast %cst_93 : f32 to vector<16x8xf32>
    %c16 = arith.constant 16 : index
    %c0_94 = arith.constant 0 : index
    %268 = vector.load %arg2[%c16, %c0_94] : memref<32x2048xf32, #tpu.memory_space<vmem>>, vector<8x512xf32>
    %c24 = arith.constant 24 : index
    %c0_95 = arith.constant 0 : index
    %269 = vector.load %arg2[%c24, %c0_95] : memref<32x2048xf32, #tpu.memory_space<vmem>>, vector<8x512xf32>
    %c1 = arith.constant 1 : index
    %c0_96 = arith.constant 0 : index
    %270 = vector.load %arg4[%c1, %c0_96] : memref<2x2048xf32, #tpu.memory_space<vmem>>, vector<1x512xf32>
    %cst_97 = arith.constant dense<0.000000e+00> : vector<16x512xf32>
    %271 = tpu.matmul %266, %268, %cst_97 {dimension_numbers = #tpu.dot_dimension_numbers<[1], [0], [0], [1], [0, 0, 1, 1], [], []>} : vector<16x8xf32>, vector<8x512xf32>, vector<16x512xf32> -> vector<16x512xf32>
    %272 = vector.broadcast %270 : vector<1x512xf32> to vector<16x512xf32>
    %273 = arith.addf %271, %272 : vector<16x512xf32>
    %cst_98 = arith.constant 0.000000e+00 : f32
    %274 = vector.broadcast %cst_98 : f32 to vector<16x512xf32>
    %275 = arith.maximumf %273, %274 : vector<16x512xf32>
    %cst_99 = arith.constant dense<0.000000e+00> : vector<16x8xf32>
    %276 = tpu.matmul %275, %269, %cst_99 {dimension_numbers = #tpu.dot_dimension_numbers<[1], [1], [0], [0], [0, 0, 1, 0], [], []>} : vector<16x512xf32>, vector<8x512xf32>, vector<16x8xf32> -> vector<16x8xf32>
    %277 = arith.addf %267, %276 : vector<16x8xf32>
    %c16_100 = arith.constant 16 : index
    %c512_101 = arith.constant 512 : index
    %278 = vector.load %arg2[%c16_100, %c512_101] : memref<32x2048xf32, #tpu.memory_space<vmem>>, vector<8x512xf32>
    %c24_102 = arith.constant 24 : index
    %c512_103 = arith.constant 512 : index
    %279 = vector.load %arg2[%c24_102, %c512_103] : memref<32x2048xf32, #tpu.memory_space<vmem>>, vector<8x512xf32>
    %c1_104 = arith.constant 1 : index
    %c512_105 = arith.constant 512 : index
    %280 = vector.load %arg4[%c1_104, %c512_105] : memref<2x2048xf32, #tpu.memory_space<vmem>>, vector<1x512xf32>
    %cst_106 = arith.constant dense<0.000000e+00> : vector<16x512xf32>
    %281 = tpu.matmul %266, %278, %cst_106 {dimension_numbers = #tpu.dot_dimension_numbers<[1], [0], [0], [1], [0, 0, 1, 1], [], []>} : vector<16x8xf32>, vector<8x512xf32>, vector<16x512xf32> -> vector<16x512xf32>
    %282 = vector.broadcast %280 : vector<1x512xf32> to vector<16x512xf32>
    %283 = arith.addf %281, %282 : vector<16x512xf32>
    %cst_107 = arith.constant 0.000000e+00 : f32
    %284 = vector.broadcast %cst_107 : f32 to vector<16x512xf32>
    %285 = arith.maximumf %283, %284 : vector<16x512xf32>
    %cst_108 = arith.constant dense<0.000000e+00> : vector<16x8xf32>
    %286 = tpu.matmul %285, %279, %cst_108 {dimension_numbers = #tpu.dot_dimension_numbers<[1], [1], [0], [0], [0, 0, 1, 0], [], []>} : vector<16x512xf32>, vector<8x512xf32>, vector<16x8xf32> -> vector<16x8xf32>
    %287 = arith.addf %277, %286 : vector<16x8xf32>
    %c16_109 = arith.constant 16 : index
    %c1024_110 = arith.constant 1024 : index
    %288 = vector.load %arg2[%c16_109, %c1024_110] : memref<32x2048xf32, #tpu.memory_space<vmem>>, vector<8x512xf32>
    %c24_111 = arith.constant 24 : index
    %c1024_112 = arith.constant 1024 : index
    %289 = vector.load %arg2[%c24_111, %c1024_112] : memref<32x2048xf32, #tpu.memory_space<vmem>>, vector<8x512xf32>
    %c1_113 = arith.constant 1 : index
    %c1024_114 = arith.constant 1024 : index
    %290 = vector.load %arg4[%c1_113, %c1024_114] : memref<2x2048xf32, #tpu.memory_space<vmem>>, vector<1x512xf32>
    %cst_115 = arith.constant dense<0.000000e+00> : vector<16x512xf32>
    %291 = tpu.matmul %266, %288, %cst_115 {dimension_numbers = #tpu.dot_dimension_numbers<[1], [0], [0], [1], [0, 0, 1, 1], [], []>} : vector<16x8xf32>, vector<8x512xf32>, vector<16x512xf32> -> vector<16x512xf32>
    %292 = vector.broadcast %290 : vector<1x512xf32> to vector<16x512xf32>
    %293 = arith.addf %291, %292 : vector<16x512xf32>
    %cst_116 = arith.constant 0.000000e+00 : f32
    %294 = vector.broadcast %cst_116 : f32 to vector<16x512xf32>
    %295 = arith.maximumf %293, %294 : vector<16x512xf32>
    %cst_117 = arith.constant dense<0.000000e+00> : vector<16x8xf32>
    %296 = tpu.matmul %295, %289, %cst_117 {dimension_numbers = #tpu.dot_dimension_numbers<[1], [1], [0], [0], [0, 0, 1, 0], [], []>} : vector<16x512xf32>, vector<8x512xf32>, vector<16x8xf32> -> vector<16x8xf32>
    %297 = arith.addf %287, %296 : vector<16x8xf32>
    %c16_118 = arith.constant 16 : index
    %c1536_119 = arith.constant 1536 : index
    %298 = vector.load %arg2[%c16_118, %c1536_119] : memref<32x2048xf32, #tpu.memory_space<vmem>>, vector<8x512xf32>
    %c24_120 = arith.constant 24 : index
    %c1536_121 = arith.constant 1536 : index
    %299 = vector.load %arg2[%c24_120, %c1536_121] : memref<32x2048xf32, #tpu.memory_space<vmem>>, vector<8x512xf32>
    %c1_122 = arith.constant 1 : index
    %c1536_123 = arith.constant 1536 : index
    %300 = vector.load %arg4[%c1_122, %c1536_123] : memref<2x2048xf32, #tpu.memory_space<vmem>>, vector<1x512xf32>
    %cst_124 = arith.constant dense<0.000000e+00> : vector<16x512xf32>
    %301 = tpu.matmul %266, %298, %cst_124 {dimension_numbers = #tpu.dot_dimension_numbers<[1], [0], [0], [1], [0, 0, 1, 1], [], []>} : vector<16x8xf32>, vector<8x512xf32>, vector<16x512xf32> -> vector<16x512xf32>
    %302 = vector.broadcast %300 : vector<1x512xf32> to vector<16x512xf32>
    %303 = arith.addf %301, %302 : vector<16x512xf32>
    %cst_125 = arith.constant 0.000000e+00 : f32
    %304 = vector.broadcast %cst_125 : f32 to vector<16x512xf32>
    %305 = arith.maximumf %303, %304 : vector<16x512xf32>
    %cst_126 = arith.constant dense<0.000000e+00> : vector<16x8xf32>
    %306 = tpu.matmul %305, %299, %cst_126 {dimension_numbers = #tpu.dot_dimension_numbers<[1], [1], [0], [0], [0, 0, 1, 0], [], []>} : vector<16x512xf32>, vector<8x512xf32>, vector<16x8xf32> -> vector<16x8xf32>
    %307 = arith.addf %297, %306 : vector<16x8xf32>
    %308 = vector.broadcast %193 : vector<1x8xf32> to vector<16x8xf32>
    %309 = arith.addf %307, %308 : vector<16x8xf32>
    %310 = arith.addf %266, %309 : vector<16x8xf32>
    %cst_127 = arith.constant dense<0.000000e+00> : vector<16xf32>
    %311 = vector.multi_reduction <add>, %310, %cst_127 [1] : vector<16x8xf32> to vector<16xf32>
    %312 = vector.shape_cast %311 : vector<16xf32> to vector<16x1xf32>
    %cst_128 = arith.constant 8.000000e+00 : f32
    %313 = vector.broadcast %cst_128 : f32 to vector<16x1xf32>
    %314 = arith.divf %312, %313 : vector<16x1xf32>
    %315 = vector.broadcast %314 : vector<16x1xf32> to vector<16x8xf32>
    %316 = arith.subf %310, %315 : vector<16x8xf32>
    %317 = arith.mulf %316, %316 : vector<16x8xf32>
    %cst_129 = arith.constant dense<0.000000e+00> : vector<16xf32>
    %318 = vector.multi_reduction <add>, %317, %cst_129 [1] : vector<16x8xf32> to vector<16xf32>
    %319 = vector.shape_cast %318 : vector<16xf32> to vector<16x1xf32>
    %cst_130 = arith.constant 8.000000e+00 : f32
    %320 = vector.broadcast %cst_130 : f32 to vector<16x1xf32>
    %321 = arith.divf %319, %320 : vector<16x1xf32>
    %322 = vector.broadcast %314 : vector<16x1xf32> to vector<16x8xf32>
    %323 = arith.subf %310, %322 : vector<16x8xf32>
    %cst_131 = arith.constant 9.99999974E-6 : f32
    %324 = vector.broadcast %cst_131 : f32 to vector<16x1xf32>
    %325 = arith.addf %321, %324 : vector<16x1xf32>
    %326 = math.rsqrt %325 : vector<16x1xf32>
    %327 = vector.broadcast %326 : vector<16x1xf32> to vector<16x8xf32>
    %328 = arith.mulf %323, %327 : vector<16x8xf32>
    %329 = vector.broadcast %194 : vector<1x8xf32> to vector<16x8xf32>
    %330 = arith.mulf %328, %329 : vector<16x8xf32>
    %331 = vector.broadcast %195 : vector<1x8xf32> to vector<16x8xf32>
    %332 = arith.addf %330, %331 : vector<16x8xf32>
    %333 = vector.extract_strided_slice %0 {offsets = [0, 8], sizes = [16, 24], strides = [1, 1]} : vector<16x32xf32> to vector<16x24xf32>
    %334 = tpu.concatenate %332, %333 in 1 : vector<16x8xf32>, vector<16x24xf32> -> vector<16x32xf32>
    %335 = vector.extract_strided_slice %334 {offsets = [0, 0], sizes = [16, 1], strides = [1, 1]} : vector<16x32xf32> to vector<16x1xf32>
    %336 = vector.extract_strided_slice %334 {offsets = [0, 8], sizes = [16, 1], strides = [1, 1]} : vector<16x32xf32> to vector<16x1xf32>
    %337 = vector.extract_strided_slice %334 {offsets = [0, 16], sizes = [16, 1], strides = [1, 1]} : vector<16x32xf32> to vector<16x1xf32>
    %338 = vector.extract_strided_slice %334 {offsets = [0, 24], sizes = [16, 1], strides = [1, 1]} : vector<16x32xf32> to vector<16x1xf32>
    %339 = vector.extract_strided_slice %334 {offsets = [0, 1], sizes = [16, 1], strides = [1, 1]} : vector<16x32xf32> to vector<16x1xf32>
    %340 = vector.extract_strided_slice %334 {offsets = [0, 9], sizes = [16, 1], strides = [1, 1]} : vector<16x32xf32> to vector<16x1xf32>
    %341 = vector.extract_strided_slice %334 {offsets = [0, 17], sizes = [16, 1], strides = [1, 1]} : vector<16x32xf32> to vector<16x1xf32>
    %342 = vector.extract_strided_slice %334 {offsets = [0, 25], sizes = [16, 1], strides = [1, 1]} : vector<16x32xf32> to vector<16x1xf32>
    %343 = vector.extract_strided_slice %334 {offsets = [0, 2], sizes = [16, 1], strides = [1, 1]} : vector<16x32xf32> to vector<16x1xf32>
    %344 = vector.extract_strided_slice %334 {offsets = [0, 10], sizes = [16, 1], strides = [1, 1]} : vector<16x32xf32> to vector<16x1xf32>
    %345 = vector.extract_strided_slice %334 {offsets = [0, 18], sizes = [16, 1], strides = [1, 1]} : vector<16x32xf32> to vector<16x1xf32>
    %346 = vector.extract_strided_slice %334 {offsets = [0, 26], sizes = [16, 1], strides = [1, 1]} : vector<16x32xf32> to vector<16x1xf32>
    %347 = vector.extract_strided_slice %334 {offsets = [0, 3], sizes = [16, 1], strides = [1, 1]} : vector<16x32xf32> to vector<16x1xf32>
    %348 = vector.extract_strided_slice %334 {offsets = [0, 11], sizes = [16, 1], strides = [1, 1]} : vector<16x32xf32> to vector<16x1xf32>
    %349 = vector.extract_strided_slice %334 {offsets = [0, 19], sizes = [16, 1], strides = [1, 1]} : vector<16x32xf32> to vector<16x1xf32>
    %350 = vector.extract_strided_slice %334 {offsets = [0, 27], sizes = [16, 1], strides = [1, 1]} : vector<16x32xf32> to vector<16x1xf32>
    %351 = vector.extract_strided_slice %334 {offsets = [0, 4], sizes = [16, 1], strides = [1, 1]} : vector<16x32xf32> to vector<16x1xf32>
    %352 = vector.extract_strided_slice %334 {offsets = [0, 12], sizes = [16, 1], strides = [1, 1]} : vector<16x32xf32> to vector<16x1xf32>
    %353 = vector.extract_strided_slice %334 {offsets = [0, 20], sizes = [16, 1], strides = [1, 1]} : vector<16x32xf32> to vector<16x1xf32>
    %354 = vector.extract_strided_slice %334 {offsets = [0, 28], sizes = [16, 1], strides = [1, 1]} : vector<16x32xf32> to vector<16x1xf32>
    %355 = vector.extract_strided_slice %334 {offsets = [0, 5], sizes = [16, 1], strides = [1, 1]} : vector<16x32xf32> to vector<16x1xf32>
    %356 = vector.extract_strided_slice %334 {offsets = [0, 13], sizes = [16, 1], strides = [1, 1]} : vector<16x32xf32> to vector<16x1xf32>
    %357 = vector.extract_strided_slice %334 {offsets = [0, 21], sizes = [16, 1], strides = [1, 1]} : vector<16x32xf32> to vector<16x1xf32>
    %358 = vector.extract_strided_slice %334 {offsets = [0, 29], sizes = [16, 1], strides = [1, 1]} : vector<16x32xf32> to vector<16x1xf32>
    %359 = vector.extract_strided_slice %334 {offsets = [0, 6], sizes = [16, 1], strides = [1, 1]} : vector<16x32xf32> to vector<16x1xf32>
    %360 = vector.extract_strided_slice %334 {offsets = [0, 14], sizes = [16, 1], strides = [1, 1]} : vector<16x32xf32> to vector<16x1xf32>
    %361 = vector.extract_strided_slice %334 {offsets = [0, 22], sizes = [16, 1], strides = [1, 1]} : vector<16x32xf32> to vector<16x1xf32>
    %362 = vector.extract_strided_slice %334 {offsets = [0, 30], sizes = [16, 1], strides = [1, 1]} : vector<16x32xf32> to vector<16x1xf32>
    %363 = vector.extract_strided_slice %334 {offsets = [0, 7], sizes = [16, 1], strides = [1, 1]} : vector<16x32xf32> to vector<16x1xf32>
    %364 = vector.extract_strided_slice %334 {offsets = [0, 15], sizes = [16, 1], strides = [1, 1]} : vector<16x32xf32> to vector<16x1xf32>
    %365 = vector.extract_strided_slice %334 {offsets = [0, 23], sizes = [16, 1], strides = [1, 1]} : vector<16x32xf32> to vector<16x1xf32>
    %366 = vector.extract_strided_slice %334 {offsets = [0, 31], sizes = [16, 1], strides = [1, 1]} : vector<16x32xf32> to vector<16x1xf32>
    %367 = tpu.concatenate %335, %336, %337, %338, %339, %340, %341, %342, %343, %344, %345, %346, %347, %348, %349, %350 in 1 : vector<16x1xf32>, vector<16x1xf32>, vector<16x1xf32>, vector<16x1xf32>, vector<16x1xf32>, vector<16x1xf32>, vector<16x1xf32>, vector<16x1xf32>, vector<16x1xf32>, vector<16x1xf32>, vector<16x1xf32>, vector<16x1xf32>, vector<16x1xf32>, vector<16x1xf32>, vector<16x1xf32>, vector<16x1xf32> -> vector<16x16xf32>
    %368 = tpu.concatenate %351, %352, %353, %354, %355, %356, %357, %358, %359, %360, %361, %362, %363, %364, %365, %366 in 1 : vector<16x1xf32>, vector<16x1xf32>, vector<16x1xf32>, vector<16x1xf32>, vector<16x1xf32>, vector<16x1xf32>, vector<16x1xf32>, vector<16x1xf32>, vector<16x1xf32>, vector<16x1xf32>, vector<16x1xf32>, vector<16x1xf32>, vector<16x1xf32>, vector<16x1xf32>, vector<16x1xf32>, vector<16x1xf32> -> vector<16x16xf32>
    %369 = tpu.concatenate %367, %368 in 1 : vector<16x16xf32>, vector<16x16xf32> -> vector<16x32xf32>
    %c0_132 = arith.constant 0 : index
    %c0_133 = arith.constant 0 : index
    %370 = vector.load %arg5[%c0_132, %c0_133] : memref<16x32xf32, #tpu.memory_space<vmem>>, vector<16x32xf32>
    tpu.vector_store %arg5[%c0_132, %c0_133], %369 {strides = array<i32>} : memref<16x32xf32, #tpu.memory_space<vmem>>, vector<16x32xf32>,
    return
  }
}

</mosaic_0001>

<bundles_post_ra>
// kernel: partialtime_forward.1
= control target key start
LH: loop header
LB: loop body
LE: loop exit
PB: predicated region body
PF: predicated region fallthrough
CT: control target
= control target key end

     0   :  { %10 = vsyncpa [#allocation3], 0  ;;  %s5727_s0 = inlined_call_operand.hbm [shape: f32[16,32], index: 0, kind: input, shape index: {}]   ;;  %s5728_s1 = inlined_call_operand.hbm [shape: f32[16,32], index: 1, kind: input, shape index: {}]   ;;  %s5729_s2 = inlined_call_operand.hbm [shape: f32[32,2048], index: 2, kind: input, shape index: {}]   ;;  %s5730_s3 = inlined_call_operand.hbm [shape: f32[16,32], index: 3, kind: input, shape index: {}]   ;;  %s5731_s4 = inlined_call_operand.hbm [shape: f32[2,2048], index: 4, kind: input, shape index: {}]   ;;  %s5732_s5 = inlined_call_operand.hbm [shape: f32[16,32], index: 5, kind: output, shape index: {}]  }
   0x1   :  { %11 = vsyncpa [#allocation6], 0 }
   0x2   :  { %12 = vsyncpa [#allocation9], 0 }
   0x3   :  { %13 = vsyncpa [#allocation4], 0  ;;  %s4987_s18 = smov [#allocation5]   ;;  %s4988_s20 = smov [#allocation8]  }
   0x4   :  { %s31_s19 = sshll.u32 %s4987_s18, 4  ;;  %s55_s21 = sshll.u32 %s4988_s20, 4  ;;  %s32_s19 = int_to_ptr.vmem [resolvable:$true] %s31_s19  ;;  %s5053_s21 = int_to_ptr.vmem [resolvable:$true] %s55_s21 }
   0x5   :  { %s4847_s24 = scalar_lea.hbm %s5728_s1, 256 }
   0x6   :  { %p4848_p0 = scmp.ne.s32.totalorder %s5728_s1, %s4847_s24  ;;  %p4851_p1 = scmp.lt.u32.totalorder %s4847_s24, %s5728_s1 }
   0x8   :  { %p4853_p2 = pnand %p4851_p1, %p4848_p0 }
   0xa   :  { %4856 = shalt.err (!%p4853_p2)
}
   0xb   :  { %s4857_s29 = scalar_lea.vmem %s32_s19, 256  ;;  %p4862_p4 = scmp.lt.s32.totalorder %s32_s19, %s32_s19 }
   0xc   :  { %p4858_p3 = scmp.ne.s32.totalorder %s32_s19, %s4857_s29  ;;  %p4863_p5 = scmp.lt.s32.totalorder %s4857_s29, %s4857_s29 }
   0xe   :  { %p4864_p6 = por %p4863_p5, %p4862_p4 }
  0x10   :  { %p4865_p7 = pnand %p4864_p6, %p4858_p3 }
  0x12   :  { %4868 = shalt.err (!%p4865_p7)
}
  0x13   :  { %s4989_s30 = smov 128   ;;  %s4990_s6 = smov 8  }
  0x14   :  { %37 = dma.hbm_to_vmem [thread:$0]  %s5728_s1, 256, %s32_s19, [#allocation6], %s4989_s30, %s4989_s30, %s4990_s6  }
  0x15   :  { %s4869_s11 = scalar_lea.hbm %s5730_s3, 256 }
  0x16   :  { %p4870_p8 = scmp.ne.s32.totalorder %s5730_s3, %s4869_s11  ;;  %p4873_p9 = scmp.lt.u32.totalorder %s4869_s11, %s5730_s3 }
  0x18   :  { %p4875_p10 = pnand %p4873_p9, %p4870_p8 }
  0x1a   :  { %4878 = shalt.err (!%p4875_p10)
}
  0x1b   :  { %s4879_s16 = scalar_lea.vmem %s5053_s21, 256  ;;  %p4884_p12 = scmp.lt.s32.totalorder %s5053_s21, %s5053_s21 }
  0x1c   :  { %p4880_p11 = scmp.ne.s32.totalorder %s5053_s21, %s4879_s16  ;;  %p4885_p13 = scmp.lt.s32.totalorder %s4879_s16, %s4879_s16 }
  0x1e   :  { %p4886_p0 = por %p4885_p13, %p4884_p12 }
  0x20   :  { %p4887_p1 = pnand %p4886_p0, %p4880_p11 }
  0x22   :  { %4890 = shalt.err (!%p4887_p1)
}
  0x23   :  { %61 = dma.hbm_to_vmem [thread:$0]  %s5730_s3, 256, %s5053_s21, [#allocation9], %s4989_s30, %s4989_s30, %s4990_s6  }
  0x24   :  { %s4991_s18 = smov [#allocation2]   ;;  %s4992_s20 = smov [#allocation7]  }
  0x25   :  { %s19_s19 = sshll.u32 %s4991_s18, 4  ;;  %s43_s22 = sshll.u32 %s4992_s20, 4  ;;  %s20_s19 = int_to_ptr.vmem [resolvable:$true] %s19_s19  ;;  %s5090_s22 = int_to_ptr.vmem [resolvable:$true] %s43_s22 }
  0x26   :  { %s4891_s25 = scalar_lea.hbm %s5727_s0, 256 }
  0x27   :  { %p4892_p2 = scmp.ne.s32.totalorder %s5727_s0, %s4891_s25  ;;  %p4895_p3 = scmp.lt.u32.totalorder %s4891_s25, %s5727_s0 }
  0x29   :  { %p4897_p4 = pnand %p4895_p3, %p4892_p2 }
  0x2b   :  { %4900 = shalt.err (!%p4897_p4)
}
  0x2c   :  { %s4901_s3 = scalar_lea.vmem %s20_s19, 256  ;;  %p4906_p6 = scmp.lt.s32.totalorder %s20_s19, %s20_s19 }
  0x2d   :  { %p4902_p5 = scmp.ne.s32.totalorder %s20_s19, %s4901_s3  ;;  %p4907_p7 = scmp.lt.s32.totalorder %s4901_s3, %s4901_s3 }
  0x2f   :  { %p4908_p8 = por %p4907_p7, %p4906_p6 }
  0x31   :  { %p4909_p9 = pnand %p4908_p8, %p4902_p5 }
  0x33   :  { %4912 = shalt.err (!%p4909_p9)
}
  0x34   :  { %25 = dma.hbm_to_vmem [thread:$0]  %s5727_s0, 256, %s20_s19, [#allocation3], %s4989_s30, %s4989_s30, %s4990_s6  }
  0x35   :  { %s4913_s10 = scalar_lea.hbm %s5729_s2, 8192 }
  0x36   :  { %p4914_p10 = scmp.ne.s32.totalorder %s5729_s2, %s4913_s10  ;;  %p4917_p11 = scmp.lt.u32.totalorder %s4913_s10, %s5729_s2 }
  0x38   :  { %p4919_p12 = pnand %p4917_p11, %p4914_p10 }
  0x3a   :  { %4922 = shalt.err (!%p4919_p12)
}
  0x3b   :  { %s4923_s15 = scalar_lea.vmem %s5090_s22, 8192  ;;  %p4928_p0 = scmp.lt.s32.totalorder %s5090_s22, %s5090_s22 }
  0x3c   :  { %p4924_p13 = scmp.ne.s32.totalorder %s5090_s22, %s4923_s15  ;;  %p4929_p1 = scmp.lt.s32.totalorder %s4923_s15, %s4923_s15 }
  0x3e   :  { %p4930_p2 = por %p4929_p1, %p4928_p0 }
  0x40   :  { %p4931_p3 = pnand %p4930_p2, %p4924_p13 }
  0x42   :  { %4934 = shalt.err (!%p4931_p3)
}
  0x43   :  { %s4993_s0 = smov 2048   ;;  %s4994_s17 = smov [#allocation10]  }
  0x44   :  { %49 = dma.hbm_to_vmem [thread:$0]  %s5729_s2, 8192, %s5090_s22, [#allocation6], %s4993_s0, %s4993_s0, %s4989_s30  }
  0x45   :  { %s68_s18 = sshll.u32 %s4994_s17, 4  ;;  %s4935_s23 = scalar_lea.hbm %s5731_s4, 512  ;;  %s69_s18 = int_to_ptr.vmem [resolvable:$true] %s68_s18 }
  0x46   :  { %p4936_p4 = scmp.ne.s32.totalorder %s5731_s4, %s4935_s23  ;;  %p4939_p5 = scmp.lt.u32.totalorder %s4935_s23, %s5731_s4 }
  0x48   :  { %p4941_p6 = pnand %p4939_p5, %p4936_p4 }
  0x4a   :  { %4944 = shalt.err (!%p4941_p6)
}
  0x4b   :  { %s4945_s28 = scalar_lea.vmem %s69_s18, 512  ;;  %p4950_p8 = scmp.lt.s32.totalorder %s69_s18, %s69_s18 }
  0x4c   :  { %p4946_p7 = scmp.ne.s32.totalorder %s69_s18, %s4945_s28  ;;  %p4951_p9 = scmp.lt.s32.totalorder %s4945_s28, %s4945_s28 }
  0x4e   :  { %p4952_p10 = por %p4951_p9, %p4950_p8 }
  0x50   :  { %p4953_p11 = pnand %p4952_p10, %p4946_p7 }
  0x52   :  { %4956 = shalt.err (!%p4953_p11)
}
  0x53   :  { %71 = dma.hbm_to_vmem [thread:$0]  %s5731_s4, 512, %s69_s18, [#allocation9]  }
  0x54   :  { %4979 = dma.done.wait [#allocation3], 256  }
  0x55   :  { %4980 = vsyncadd [#allocation3], 4294967040 }
  0x56   :  { %4981 = dma.done.wait [#allocation6], 8448  }
  0x57   :  { %4982 = vsyncadd [#allocation6], 4294958848 }
  0x58   :  { %4983 = dma.done.wait [#allocation9], 768  }
  0x59   :  { %4984 = vsyncadd [#allocation9], 4294966528  ;;  %vm138_vm0 = vcmask 64512   ;;  %v5137_v0 = vld [vmem:[#allocation5] sm:$0xff]  ;;  %v5139_v1 = vld [vmem:[#allocation2] sm:$0xff]  ;;  %v89_v3 = vlaneseq  ;;  %vm226_vm1 = vcmask 31744  }
  0x5a   :  { %v5141_v2 = vld [vmem:[#allocation2 + $0x8] sm:$0xff]  ;;  %4604 = vmatprep.subr.mxu0 %v5137_v0  ;;  %4606 = vmatprep.mubr.msk.f32.mxu0 %vm138_vm0, %v5139_v1  ;;  %v5154_v6 = vld [vmem:[#allocation8] sm:$0xff]  ;;  %s4995_s4 = smov 120   ;;  %vm5165_vm2 = vmpackc.low %vm226_vm1, %vm226_vm1  ;;  %vm314_vm4 = vcmask 130048   ;;  %s4996_s29 = smov 112   ;;  %vm4349_vm6 = vcmask 7168  }
  0x5b   :  { %4605 = vmatpush3.msra.mxu0 %v5137_v0  ;;  %v5149_v4 = vshrl.u32 %v89_v3, 7  ;;  %v93_v19 = vand.u32 127, %v89_v3  ;;  %s4997_s3 = smov 116   ;;  %s4998_s21 = smov 124   ;;  %vm4352_vm7 = vcmask 15360   ;;  %vm4355_vm8 = vcmask 23552  }
  0x5c   :  { %4607 = vmatmul.mubr.msk.f32.vlgmr.msra.gmra.mrb[0].mxu0 %vm138_vm0, %v5141_v2  ;;  %s4999_s7 = smov 108   ;;  %s5000_s8 = smov 104   ;;  %vm4360_vm9 = vcmask 39936   ;;  %vm4363_vm10 = vcmask 48128   ;;  %vm4366_vm11 = vcmask 56320   ;;  %vm4371_vm12 = vcmask 72704  }
  0x5d   :  { %v5152_v5 = vsub.s32 0, %v5149_v4  ;;  %v91_v18 = vadd.s32 8, %v5149_v4  ;;  %v122_v21 = vand.u32 1, %v93_v19  ;;  %v98_v22 = vand.u32 1, %v5149_v4  ;;  %s5001_s9 = smov 4   ;;  %s5003_s10 = smov 110  }
  0x5e   :  { %s5004_s11 = smov 117   ;;  %s5005_s12 = smov 103   ;;  %vm4374_vm13 = vcmask 80896   ;;  %vm4377_vm14 = vcmask 89088   ;;  %vm4380_vm15 = vcmask 97280  }
  0x5f   :  { %v137_v7 = vrot.slane %v5154_v6, %v5152_v5  ;;  %v105_v20 = vand.u32 1, %v91_v18  ;;  %vm5180_vm5 = vcmp.eq.s32.totalorder %v98_v22, %v122_v21  ;;  %s5006_s13 = smov 127   ;;  %s5007_s14 = smov 113  }
  0x60   :  { %s5008_s15 = smov 106   ;;  %s5009_s0 = smov 2  }
  0x61   :  { %vm5176_vm3 = vcmp.eq.s32.totalorder %v105_v20, %v122_v21  ;;  %s5010_s16 = smov 123   ;;  %s5011_s1 = smov 109  }
  0x62   :  { %s5012_s17 = smov 5   ;;  %s5013_s18 = smov 126  }
  0x63   :  { %s5014_s19 = smov 119   ;;  %s5015_s20 = smov 121  }
  0x64   :  { %s5016_s23 = smov 114   ;;  %s5017_s24 = smov 107  }
  0x65   :  { %s5018_s25 = smov 3   ;;  %s5019_s26 = smov 6  }
  0x66   :  { %s5020_s27 = smov 9   ;;  %s5021_s28 = smov 16  }
  0x67   :  { %s5022_s2 = smov [#allocation11]  }
  0x68   :  { %s4482_s22 = sshll.u32 %s5022_s2, 4  ;;  %s4483_s22 = int_to_ptr.vmem [resolvable:$true] %s4482_s22 }
  0x69   :  { %p4962_p13 = scmp.lt.s32.totalorder %s4483_s22, %s4483_s22 }
 0x12f   :  { %v4608_v8 = vpop.f32.mrb[0].mxu0 }
 0x130   :  { %v217_v9 = vadd.f32 %v4608_v8, %v137_v7  ;;  %v211_v10 = vpop.f32.mrb[1].mxu0 }
 0x131   :  { %v212_v11 = vadd.f32 %v211_v10, %v137_v7 }
 0x133   :  { %4613 = vmatprep.mubr.msk.f32.mxu1 %vm226_vm1, %v212_v11  ;;  %v5159_v12 = vpack.i.bf16 %v217_v9, %v212_v11 }
 0x135   :  { %4757 = vrot.lane.b32.xlu0 %v5159_v12, %s4995_s4 }
 0x1a7   :  { %v4758_v13 = vpop.permute.xlu0 %4757 }
 0x1a8   :  { %v4760_v14 = vunpack.i.h.bf16 %v4758_v13  ;;  %v4759_v15 = vunpack.i.l.bf16 %v4758_v13 }
 0x1aa   :  { %v4680_v17 = vpack.c.bf16 %v4760_v14, %v4759_v15 }
 0x1ac   :  { %4682 = vmatprep.subr.msk.bf16.mxu1 %vm5165_vm2, %v4680_v17 }
 0x1ad   :  { %4685 = vmatpush3.bf16.xpose.msk.msra.mxu1 %vm5165_vm2, %v4680_v17 }
 0x1b4   :  { %4614 = vmatmul.mubr.msk.f32.vlgmr.msra.gmra.mrb[0].mxu1 %vm226_vm1, %v217_v9 }
 0x287   :  { %v4615_v23 = vpop.f32.mrb[0].mxu1 }
 0x288   :  { %v311_v25 = vmul.f32 0.5, %v4615_v23  ;;  %v301_v26 = vpop.f32.mrb[1].mxu1 }
 0x289   :  { %v310_v28 = vmul.f32 0.5, %v301_v26 }
 0x28a   :  { %v313_v29 = vsel %vm5176_vm3, %v311_v25, -1e+30 }
 0x28b   :  { %v318_v30 = vsel %vm314_vm4, %v313_v29, -inf  ;;  %v312_v31 = vsel %vm5180_vm5, %v310_v28, -1e+30 }
 0x28c   :  { %319 = vmax.xlane.f32.xlu1 %v318_v30  ;;  %v315_v32 = vsel %vm314_vm4, %v312_v31, -inf }
 0x28d   :  { %316 = vmax.xlane.f32.xlu0 %v315_v32 }
 0x29d   :  { %4762 = vrot.lane.b32.xlu1 %v5159_v12, %s4996_s29 }
 0x2a1   :  { %4767 = vrot.lane.b32.xlu1 %v5159_v12, %s4997_s3 }
 0x2a3   :  { %426 = vrot.lane.b32.xlu0 %v217_v9, %s4998_s21 }
 0x319   :  { %v320_v33 = vpop.xlane.xlu1 %319 }
 0x31a   :  { %v322_v34 = vsub.f32 %v313_v29, %v320_v33  ;;  %v317_v35 = vpop.xlane.xlu0 %316 }
 0x31b   :  { %v321_v36 = vsub.f32 %v312_v31, %v317_v35 }
 0x31c   :  { %v325_v37 = vmul.f32 1.442695, %v322_v34 }
 0x31d   :  { %v323_v38 = vmul.f32 1.442695, %v321_v36  ;;  %v4763_v39 = vpop.permute.xlu1 %4762 }
 0x31e   :  { %4796 = vpow2.f32 %v325_v37  ;;  %v4765_v40 = vunpack.i.h.bf16 %v4763_v39  ;;  %v4764_v41 = vunpack.i.l.bf16 %v4763_v39  ;;  %v427_v58 = vpop.permute.xlu0 %426 }
 0x31f   :  { %4798 = vpow2.f32 %v323_v38 }
 0x320   :  { %v4686_v42 = vpack.c.bf16 %v4765_v40, %v4764_v41  ;;  %v5227_v40 = vsub.s32 1, %v5149_v4 }
 0x321   :  { %v4768_v43 = vpop.permute.xlu1 %4767 }
 0x322   :  { %v4770_v44 = vunpack.i.h.bf16 %v4768_v43  ;;  %v4769_v45 = vunpack.i.l.bf16 %v4768_v43  ;;  %4687 = vmatprep.subr.bf16.mxu0 %v4686_v42  ;;  %v641_v41 = vrot.slane %v5154_v6, %v5227_v40 }
 0x323   :  { %4689 = vmatpush3.bf16.msra.mxu0 %v4686_v42 }
 0x324   :  { %v4690_v46 = vpack.c.bf16 %v4770_v44, %v4769_v45 }
 0x326   :  { %4692 = vmatprep.subr.msk.bf16.mxu0 %vm5165_vm2, %v4690_v46 }
 0x328   :  { %v4797_v47 = vpop.eup %4796 }
 0x329   :  { %v330_v48 = vsel %vm314_vm4, %v4797_v47, 0.0  ;;  %v4799_v49 = vpop.eup %4798 }
 0x32a   :  { %331 = vadd.xlane.f32.xlu1 %v330_v48  ;;  %v327_v50 = vsel %vm314_vm4, %v4799_v49, 0.0 }
 0x32e   :  { %328 = vadd.xlane.f32.xlu1 %v327_v50 }
 0x33f   :  { %424 = vrot.lane.b32.xlu1 %v212_v11, %s4998_s21 }
 0x3b7   :  { %v332_v51 = vpop.xlane.xlu1 %331 }
 0x3b8   :  { %4800 = vrcp.f32 %v332_v51 }
 0x3bb   :  { %v329_v52 = vpop.xlane.xlu1 %328 }
 0x3bc   :  { %4802 = vrcp.f32 %v329_v52 }
 0x3bf   :  { %v425_v57 = vpop.permute.xlu1 %424 }
 0x3c2   :  { %v4801_v53 = vpop.eup %4800 }
 0x3c3   :  { %v336_v56 = vmul.f32 %v4801_v53, %v4797_v47 }
 0x3c6   :  { %v4803_v54 = vpop.eup %4802 }
 0x3c7   :  { %v335_v55 = vmul.f32 %v4803_v54, %v4799_v49 }
 0x3c9   :  { %4620 = vmatprep.mubr.msk.f32.mxu0 %vm314_vm4, %v335_v55 }
 0x3ca   :  { %4621 = vmatmul.mubr.msk.f32.vlgmr.msra.gmra.mrb[2].mxu0 %vm314_vm4, %v336_v56 }
 0x3cb   :  { %4695 = vmatpush3.bf16.xpose.msk.msra.mxu0 %vm5165_vm2, %v4690_v46  ;;  %4627 = vmatprep.mubr.msk.f32.mxu0 %vm226_vm1, %v425_v57 }
 0x3d2   :  { %4628 = vmatmul.mubr.msk.f32.vlgmr.msra.gmra.mrb[4].mxu0 %vm226_vm1, %v427_v58 }
 0x49d   :  { %v4622_v59 = vpop.f32.mrb[2].mxu0 }
 0x49e   :  { %v415_v60 = vpop.f32.mrb[3].mxu0 }
 0x4a5   :  { %v4629_v61 = vpop.f32.mrb[4].mxu0 }
 0x4a6   :  { %v516_v62 = vmul.f32 0.5, %v4629_v61  ;;  %v506_v63 = vpop.f32.mrb[5].mxu0  ;;  %v770_v61 = vld [vmem:[#allocation7 + $0x10] sm:$0xff] }
 0x4a7   :  { %v515_v3 = vmul.f32 0.5, %v506_v63  ;;  %v967_v63 = vld [vmem:[#allocation7 + $0x28] sm:$0xff] }
 0x4a8   :  { %v518_v7 = vsel %vm5176_vm3, %v516_v62, -1e+30  ;;  %v5002_v62 = vmov 0.0  }
 0x4a9   :  { %v522_v8 = vsel %vm314_vm4, %v518_v7, -inf  ;;  %v517_v9 = vsel %vm5180_vm5, %v515_v3, -1e+30  ;;  %868 = vmatprep.mubr.f32.mxu0 %v5002_v62  ;;  %v969_v3 = vld [vmem:[#allocation7 + $0x38] sm:$0xff] }
 0x4aa   :  { %523 = vmax.xlane.f32.xlu0 %v522_v8  ;;  %v519_v10 = vsel %vm314_vm4, %v517_v9, -inf }
 0x4ab   :  { %520 = vmax.xlane.f32.xlu1 %v519_v10 }
 0x537   :  { %v524_v11 = vpop.xlane.xlu0 %523 }
 0x538   :  { %v526_v13 = vsub.f32 %v518_v7, %v524_v11  ;;  %v521_v14 = vpop.xlane.xlu1 %520 }
 0x539   :  { %v525_v15 = vsub.f32 %v517_v9, %v521_v14  ;;  %v5240_v14 = vsub.s32 2, %v5149_v4 }
 0x53a   :  { %v529_v17 = vmul.f32 1.442695, %v526_v13 }
 0x53b   :  { %v527_v18 = vmul.f32 1.442695, %v525_v15  ;;  %v5243_v15 = vsub.s32 3, %v5149_v4 }
 0x53c   :  { %4804 = vpow2.f32 %v529_v17 }
 0x53d   :  { %4806 = vpow2.f32 %v527_v18  ;;  %v759_v18 = vrot.slane %v5154_v6, %v5240_v14 }
 0x546   :  { %v4805_v19 = vpop.eup %4804 }
 0x547   :  { %v534_v20 = vsel %vm314_vm4, %v4805_v19, 0.0  ;;  %v4807_v21 = vpop.eup %4806 }
 0x548   :  { %535 = vadd.xlane.f32.xlu1 %v534_v20  ;;  %v531_v22 = vsel %vm314_vm4, %v4807_v21, 0.0  ;;  %v765_v20 = vrot.slane %v5154_v6, %v5243_v15 }
 0x54c   :  { %532 = vadd.xlane.f32.xlu1 %v531_v22 }
 0x55d   :  { %4772 = vrot.lane.b32.xlu1 %v5159_v12, %s4999_s7 }
 0x561   :  { %643 = vrot.lane.b32.xlu1 %v5137_v0, %s5000_s8 }
 0x5d5   :  { %v536_v23 = vpop.xlane.xlu1 %535 }
 0x5d6   :  { %4808 = vrcp.f32 %v536_v23 }
 0x5d9   :  { %v533_v25 = vpop.xlane.xlu1 %532 }
 0x5da   :  { %4810 = vrcp.f32 %v533_v25 }
 0x5dd   :  { %v4773_v26 = vpop.permute.xlu1 %4772 }
 0x5de   :  { %v4775_v28 = vunpack.i.h.bf16 %v4773_v26  ;;  %v4774_v29 = vunpack.i.l.bf16 %v4773_v26 }
 0x5e0   :  { %v4696_v30 = vpack.c.bf16 %v4775_v28, %v4774_v29  ;;  %v4809_v31 = vpop.eup %4808  ;;  %v966_v28 = vld [vmem:[#allocation7 + $0x20] sm:$0xff]  ;;  %v968_v29 = vld [vmem:[#allocation7 + $0x30] sm:$0xff] }
 0x5e1   :  { %v540_v34 = vmul.f32 %v4809_v31, %v4805_v19  ;;  %v644_v12 = vpop.permute.xlu1 %643  ;;  %v971_v31 = vld [vmem:[#allocation7 + $0xa8] sm:$0xff] }
 0x5e2   :  { %4697 = vmatprep.subr.bf16.mxu1 %v4696_v30 }
 0x5e3   :  { %4699 = vmatpush3.bf16.msra.mxu1 %v4696_v30 }
 0x5e4   :  { %v4811_v32 = vpop.eup %4810  ;;  %4637 = vmatprep.subr.mxu1 %v644_v12 }
 0x5e5   :  { %v539_v33 = vmul.f32 %v4811_v32, %v4807_v21  ;;  %v973_v32 = vld [vmem:[#allocation7 + $0xb8] sm:$0xff] }
 0x5e7   :  { %4634 = vmatprep.mubr.msk.f32.mxu1 %vm314_vm4, %v539_v33  ;;  %v970_v33 = vld [vmem:[#allocation7 + $0xa0] sm:$0xff] }
 0x5e8   :  { %4635 = vmatmul.mubr.msk.f32.vlgmr.msra.gmra.mrb[2].mxu1 %vm314_vm4, %v540_v34  ;;  %v972_v34 = vld [vmem:[#allocation7 + $0xb0] sm:$0xff] }
 0x5e9   :  { %4638 = vmatpush3.msra.mxu1 %v644_v12  ;;  %v773_v12 = vld [vmem:[#allocation7 + $0x88] sm:$0xff] }
 0x6bb   :  { %v4636_v0 = vpop.f32.mrb[2].mxu1 }
 0x6bc   :  { %632 = vrot.lane.b32.xlu1 %v4636_v0, %s5001_s9  ;;  %v619_v35 = vpop.f32.mrb[3].mxu1  ;;  %v775_v0 = vld [vmem:[#allocation7 + $0x98] sm:$0xff] }
 0x6bd   :  { %630 = vrot.lane.b32.xlu0 %v619_v35, %s5001_s9 }
 0x72e   :  { %v633_v36 = vpop.permute.xlu1 %632 }
 0x72f   :  { %v631_v37 = vpop.permute.xlu0 %630  ;;  %v637_v39 = vsel %vm226_vm1, %v4622_v59, %v633_v36  ;;  %v771_v59 = vld [vmem:[#allocation7 + $0x18] sm:$0xff] }
 0x730   :  { %v636_v38 = vsel %vm226_vm1, %v415_v60, %v631_v37  ;;  %881 = vmatprep.subr.mxu1 %v771_v59  ;;  %v768_v60 = vld [vmem:[#allocation7] sm:$0xff] }
 0x731   :  { %4639 = vmatprep.mubr.msk.f32.mxu1 %vm138_vm0, %v636_v38 }
 0x732   :  { %4640 = vmatmul.mubr.msk.f32.vlgmr.msra.gmra.mrb[4].mxu1 %vm138_vm0, %v637_v39  ;;  %v975_v39 = vld [vmem:[#allocation10 + $0x8] ss:$2 sm:$0xf] }
 0x733   :  { %882 = vmatpush1.msra.mxu1 %v770_v61  ;;  %945 = vmatprep.mubr.f32.mxu1 %v5002_v62 }
 0x734   :  { %1074 = vmatprep.subr.mxu1 %v969_v3 }
 0x805   :  { %v4641_v42 = vpop.f32.mrb[4].mxu1 }
 0x806   :  { %v724_v43 = vadd.f32 %v4641_v42, %v641_v41  ;;  %v718_v44 = vpop.f32.mrb[5].mxu1 }
 0x807   :  { %v719_v45 = vadd.f32 %v718_v44, %v641_v41 }
 0x808   :  { %v728_v46 = vadd.f32 %v724_v43, %v5141_v2  ;;  %v776_v43 = vld [vmem:[#allocation10] ss:$2 sm:$0xf] }
 0x809   :  { %v727_v47 = vadd.f32 %v719_v45, %v5139_v1  ;;  %v769_v1 = vld [vmem:[#allocation7 + $0x8] sm:$0xff]  ;;  %v789_v59 = vrot.slane %v776_v43, %v5240_v14 }
 0x80a   :  { %v732_v48 = vsel %vm138_vm0, %v728_v46, 0.0  ;;  %804 = vmatprep.subr.mxu0 %v769_v1  ;;  %v781_v1 = vrot.slane %v776_v43, %v5152_v5 }
 0x80b   :  { %733 = vadd.xlane.f32.xlu0 %v732_v48  ;;  %v729_v49 = vsel %vm138_vm0, %v727_v47, 0.0  ;;  %805 = vmatpush1.msra.mxu0 %v768_v60  ;;  %v984_v48 = vrot.slane %v975_v39, %v5227_v40 }
 0x80c   :  { %730 = vadd.xlane.f32.xlu1 %v729_v49  ;;  %997 = vmatprep.subr.mxu0 %v967_v63  ;;  %v992_v49 = vrot.slane %v975_v39, %v5243_v15 }
 0x898   :  { %v734_v50 = vpop.xlane.xlu0 %733 }
 0x899   :  { %v737_v51 = vmul.f32 0.125, %v734_v50  ;;  %v731_v52 = vpop.xlane.xlu1 %730  ;;  %v785_v50 = vrot.slane %v776_v43, %v5227_v40 }
 0x89a   :  { %v736_v53 = vmul.f32 0.125, %v731_v52 }
 0x89b   :  { %v739_v54 = vsub.f32 %v728_v46, %v737_v51  ;;  %v980_v46 = vrot.slane %v975_v39, %v5152_v5 }
 0x89c   :  { %v738_v55 = vsub.f32 %v727_v47, %v736_v53  ;;  %v988_v47 = vrot.slane %v975_v39, %v5240_v14 }
 0x89d   :  { %v741_v56 = vmul.f32 %v739_v54, %v739_v54 }
 0x89e   :  { %v740_v57 = vmul.f32 %v738_v55, %v738_v55 }
 0x89f   :  { %v745_v58 = vsel %vm138_vm0, %v741_v56, 0.0 }
 0x8a0   :  { %746 = vadd.xlane.f32.xlu1 %v745_v58  ;;  %v742_v2 = vsel %vm138_vm0, %v740_v57, 0.0  ;;  %v793_v57 = vrot.slane %v776_v43, %v5243_v15 }
 0x8a1   :  { %743 = vadd.xlane.f32.xlu0 %v742_v2 }
 0x92d   :  { %v747_v7 = vpop.xlane.xlu1 %746 }
 0x92e   :  { %v749_v8 = vmul.f32 0.125, %v747_v7  ;;  %v744_v9 = vpop.xlane.xlu0 %743 }
 0x92f   :  { %v748_v10 = vmul.f32 0.125, %v744_v9 }
 0x930   :  { %v751_v11 = vadd.f32 1e-05, %v749_v8 }
 0x931   :  { %v750_v13 = vadd.f32 1e-05, %v748_v10 }
 0x932   :  { %4812 = vrsqrt.f32 %v751_v11 }
 0x933   :  { %4814 = vrsqrt.f32 %v750_v13 }
 0x93c   :  { %v4813_v17 = vpop.eup %4812 }
 0x93d   :  { %v4815_v19 = vpop.eup %4814  ;;  %v755_v21 = vmul.f32 %v4813_v17, %v739_v54 }
 0x93e   :  { %v754_v22 = vmul.f32 %v4815_v19, %v738_v55  ;;  %v774_v19 = vld [vmem:[#allocation7 + $0x90] sm:$0xff] }
 0x93f   :  { %v761_v25 = vmul.f32 %v759_v18, %v755_v21 }
 0x940   :  { %v760_v23 = vmul.f32 %v759_v18, %v754_v22  ;;  %v772_v18 = vld [vmem:[#allocation7 + $0x80] sm:$0xff] }
 0x941   :  { %v5255_v30 = vadd.f32 %v765_v20, %v761_v25  ;;  %v1462_v25 = vld [vmem:[#allocation7 + $0x58] sm:$0xff] }
 0x942   :  { %v5249_v26 = vadd.f32 %v765_v20, %v760_v23  ;;  %v1460_v23 = vld [vmem:[#allocation7 + $0x48] sm:$0xff] }
 0x944   :  { %4512 = vmatmul.mubr.msk.f32.vlgmr.msra.gmra.mrb[6].mxu0 %vm138_vm0, %v5249_v26  ;;  %4514 = vmatmul.mubr.msk.f32.vlgmr.msra.gmra.mrb[6].mxu1 %vm138_vm0, %v5249_v26 }
 0x945   :  { %998 = vmatpush1.msra.mxu0 %v966_v28  ;;  %1075 = vmatpush1.msra.mxu1 %v968_v29 }
 0x946   :  { %874 = vmatprep.mubr.f32.mxu0 %v5002_v62  ;;  %951 = vmatprep.mubr.f32.mxu1 %v5002_v62 }
 0x947   :  { %1159 = vmatprep.subr.mxu0 %v971_v31  ;;  %1234 = vmatprep.subr.mxu1 %v973_v32 }
 0x948   :  { %4513 = vmatmul.mubr.msk.f32.gmra.mrb[8].mxu0 %vm138_vm0, %v5255_v30  ;;  %4515 = vmatmul.mubr.msk.f32.gmra.mrb[8].mxu1 %vm138_vm0, %v5255_v30 }
 0x949   :  { %1061 = vmatprep.mubr.f32.mxu0 %v5002_v62  ;;  %1138 = vmatprep.mubr.f32.mxu1 %v5002_v62 }
 0x94c   :  { %4516 = vmatmul.mubr.msk.f32.vlgmr.msra.gmra.mrb[10].mxu0 %vm138_vm0, %v5249_v26  ;;  %4518 = vmatmul.mubr.msk.f32.vlgmr.msra.gmra.mrb[10].mxu1 %vm138_vm0, %v5249_v26 }
 0x94d   :  { %1067 = vmatprep.mubr.f32.mxu0 %v5002_v62  ;;  %1144 = vmatprep.mubr.f32.mxu1 %v5002_v62 }
 0x94e   :  { %1160 = vmatpush1.xpose.msra.mxu0 %v970_v33  ;;  %1235 = vmatpush1.xpose.msra.mxu1 %v972_v34 }
 0x94f   :  { %1309 = vmatprep.subr.mxu0 %v773_v12  ;;  %1384 = vmatprep.subr.mxu1 %v775_v0 }
 0x950   :  { %4517 = vmatmul.mubr.msk.f32.gmra.mrb[12].mxu0 %vm138_vm0, %v5255_v30  ;;  %4519 = vmatmul.mubr.msk.f32.gmra.mrb[12].mxu1 %vm138_vm0, %v5255_v30 }
 0xa17   :  { %v870_v35 = vpop.f32.mrb[6].mxu0  ;;  %v947_v36 = vpop.f32.mrb[6].mxu1 }
 0xa18   :  { %v872_v37 = vpop.f32.mrb[7].mxu0  ;;  %v949_v38 = vpop.f32.mrb[7].mxu1  ;;  %v871_v31 = vadd.f32 %v870_v35, %v781_v1  ;;  %v948_v32 = vadd.f32 %v947_v36, %v789_v59 }
 0xa19   :  { %v873_v60 = vadd.f32 %v872_v37, %v785_v50  ;;  %v950_v20 = vadd.f32 %v949_v38, %v793_v57 }
 0xa1a   :  { %v958_v39 = vmax.f32 %v871_v31, 0.0  ;;  %v960_v43 = vmax.f32 %v948_v32, 0.0 }
 0xa1b   :  { %v5275_v41 = vpop.f32.mrb[8].mxu0  ;;  %v5277_v42 = vpop.f32.mrb[8].mxu1  ;;  %v959_v12 = vmax.f32 %v873_v60, 0.0  ;;  %v961_v0 = vmax.f32 %v950_v20, 0.0 }
 0xa1c   :  { %v878_v44 = vpop.f32.mrb[9].mxu0  ;;  %v955_v45 = vpop.f32.mrb[9].mxu1  ;;  %v954_v35 = vadd.f32 %v5277_v42, %v789_v59  ;;  %v1466_v42 = vld [vmem:[#allocation7 + $0xd8] sm:$0xff] }
 0xa1d   :  { %v879_v37 = vadd.f32 %v878_v44, %v785_v50  ;;  %v956_v38 = vadd.f32 %v955_v45, %v793_v57  ;;  %v1463_v50 = vld [vmem:[#allocation7 + $0xc0] sm:$0xff] }
 0xa1e   :  { %v964_v45 = vmax.f32 %v954_v35, 0.0 }
 0xa1f   :  { %v1063_v51 = vpop.f32.mrb[10].mxu0  ;;  %v1140_v52 = vpop.f32.mrb[10].mxu1  ;;  %v963_v36 = vmax.f32 %v879_v37, 0.0 }
 0xa20   :  { %v1064_v53 = vadd.f32 %v1063_v51, %v980_v46  ;;  %v1141_v54 = vadd.f32 %v1140_v52, %v988_v47  ;;  %v1065_v55 = vpop.f32.mrb[11].mxu0  ;;  %v1142_v56 = vpop.f32.mrb[11].mxu1  ;;  %v1465_v51 = vld [vmem:[#allocation7 + $0xd0] sm:$0xff]  ;;  %v1805_v52 = vld [vmem:[#allocation7 + $0x68] sm:$0xff] }
 0xa21   :  { %v1066_v58 = vadd.f32 %v1065_v55, %v984_v48  ;;  %v1143_v2 = vadd.f32 %v1142_v56, %v992_v49 }
 0xa22   :  { %v1151_v8 = vmax.f32 %v1064_v53, 0.0  ;;  %v1153_v9 = vmax.f32 %v1141_v54, 0.0  ;;  %v1807_v53 = vld [vmem:[#allocation7 + $0x78] sm:$0xff] }
 0xa23   :  { %v1152_v61 = vmax.f32 %v1066_v58, 0.0  ;;  %v1154_v63 = vmax.f32 %v1143_v2, 0.0  ;;  %v1069_v3 = vpop.f32.mrb[12].mxu0  ;;  %v1146_v7 = vpop.f32.mrb[12].mxu1 }
 0xa24   :  { %v1070_v10 = vadd.f32 %v1069_v3, %v980_v46  ;;  %v1147_v11 = vadd.f32 %v1146_v7, %v988_v47  ;;  %v1071_v13 = vpop.f32.mrb[13].mxu0  ;;  %v1148_v17 = vpop.f32.mrb[13].mxu1  ;;  %v877_v46 = vadd.f32 %v5275_v41, %v781_v1  ;;  %v965_v47 = vmax.f32 %v956_v38, 0.0  ;;  %v1464_v41 = vld [vmem:[#allocation7 + $0xc8] sm:$0xff] }
 0xa25   :  { %v1072_v21 = vadd.f32 %v1071_v13, %v984_v48  ;;  %v1149_v22 = vadd.f32 %v1148_v17, %v992_v49  ;;  %1223 = vmatprep.mubr.f32.mxu0 %v1152_v61  ;;  %1298 = vmatprep.mubr.f32.mxu1 %v1154_v63  ;;  %v1459_v48 = vld [vmem:[#allocation7 + $0x40] sm:$0xff]  ;;  %v1461_v49 = vld [vmem:[#allocation7 + $0x50] sm:$0xff] }
 0xa26   :  { %1224 = vmatmul.mubr.f32.vlgmr.msra.gmra.mrb[14].mxu0 %v1151_v8  ;;  %1299 = vmatmul.mubr.f32.vlgmr.msra.gmra.mrb[14].mxu1 %v1153_v9  ;;  %v1155_v33 = vmax.f32 %v1070_v10, 0.0  ;;  %v1157_v34 = vmax.f32 %v1147_v11, 0.0  ;;  %v962_v44 = vmax.f32 %v877_v46, 0.0  ;;  %v1468_v10 = vld [vmem:[#allocation10 + $0x10] ss:$2 sm:$0xf] }
 0xa27   :  { %v1156_v28 = vmax.f32 %v1072_v21, 0.0  ;;  %v1158_v29 = vmax.f32 %v1149_v22, 0.0  ;;  %1310 = vmatpush1.xpose.msra.mxu0 %v772_v18  ;;  %1385 = vmatpush1.xpose.msra.mxu1 %v774_v19  ;;  %v1473_v21 = vrot.slane %v1468_v10, %v5152_v5  ;;  %v1481_v22 = vrot.slane %v1468_v10, %v5240_v14 }
 0xa28   :  { %1490 = vmatprep.subr.mxu0 %v1460_v23  ;;  %1567 = vmatprep.subr.mxu1 %v1462_v25  ;;  %v1477_v23 = vrot.slane %v1468_v10, %v5227_v40  ;;  %v1485_v25 = vrot.slane %v1468_v10, %v5243_v15 }
 0xa29   :  { %1228 = vmatprep.mubr.f32.mxu0 %v1156_v28  ;;  %1303 = vmatprep.mubr.f32.mxu1 %v1158_v29 }
 0xa2a   :  { %1229 = vmatmul.mubr.f32.gmra.mrb[16].mxu0 %v1155_v33  ;;  %1304 = vmatmul.mubr.f32.gmra.mrb[16].mxu1 %v1157_v34 }
 0xa2b   :  { %1373 = vmatprep.mubr.f32.mxu0 %v959_v12  ;;  %1448 = vmatprep.mubr.f32.mxu1 %v961_v0 }
 0xa2e   :  { %1374 = vmatmul.mubr.f32.vlgmr.msra.gmra.mrb[18].mxu0 %v958_v39  ;;  %1449 = vmatmul.mubr.f32.vlgmr.msra.gmra.mrb[18].mxu1 %v960_v43 }
 0xa2f   :  { %1378 = vmatprep.mubr.f32.mxu0 %v963_v36  ;;  %1453 = vmatprep.mubr.f32.mxu1 %v965_v47 }
 0xa30   :  { %1491 = vmatpush1.msra.mxu0 %v1459_v48  ;;  %1568 = vmatpush1.msra.mxu1 %v1461_v49 }
 0xa31   :  { %1652 = vmatprep.subr.mxu0 %v1464_v41  ;;  %1727 = vmatprep.subr.mxu1 %v1466_v42  ;;  %v1806_v41 = vld [vmem:[#allocation7 + $0x70] sm:$0xff] }
 0xa32   :  { %1379 = vmatmul.mubr.f32.gmra.mrb[20].mxu0 %v962_v44  ;;  %1454 = vmatmul.mubr.f32.gmra.mrb[20].mxu1 %v964_v45  ;;  %v1804_v45 = vld [vmem:[#allocation7 + $0x60] sm:$0xff] }
 0xa33   :  { %1554 = vmatprep.mubr.f32.mxu0 %v5002_v62  ;;  %1631 = vmatprep.mubr.f32.mxu1 %v5002_v62 }
 0xa36   :  { %4520 = vmatmul.mubr.msk.f32.vlgmr.msra.gmra.mrb[22].mxu0 %vm138_vm0, %v5249_v26  ;;  %4522 = vmatmul.mubr.msk.f32.vlgmr.msra.gmra.mrb[22].mxu1 %vm138_vm0, %v5249_v26 }
 0xa37   :  { %1560 = vmatprep.mubr.f32.mxu0 %v5002_v62  ;;  %1637 = vmatprep.mubr.f32.mxu1 %v5002_v62 }
 0xa38   :  { %1653 = vmatpush1.xpose.msra.mxu0 %v1463_v50  ;;  %1728 = vmatpush1.xpose.msra.mxu1 %v1465_v51 }
 0xa39   :  { %1835 = vmatprep.subr.mxu0 %v1805_v52  ;;  %1912 = vmatprep.subr.mxu1 %v1807_v53 }
 0xa3a   :  { %4521 = vmatmul.mubr.msk.f32.gmra.mrb[24].mxu0 %vm138_vm0, %v5255_v30  ;;  %4523 = vmatmul.mubr.msk.f32.gmra.mrb[24].mxu1 %vm138_vm0, %v5255_v30 }
 0xaf9   :  { %v1225_v54 = vpop.f32.mrb[14].mxu0  ;;  %v1300_v55 = vpop.f32.mrb[14].mxu1 }
 0xafa   :  { %v1301_v56 = vadd.f32 %v1300_v55, %v1225_v54  ;;  %v1227_v57 = vpop.f32.mrb[15].mxu0  ;;  %v1302_v58 = vpop.f32.mrb[15].mxu1  ;;  %v1809_v55 = vld [vmem:[#allocation7 + $0xe8] sm:$0xff] }
 0xafb   :  { %v1808_v57 = vld [vmem:[#allocation7 + $0xe0] sm:$0xff]  ;;  %v1810_v58 = vld [vmem:[#allocation7 + $0xf0] sm:$0xff] }
 0xafd   :  { %v1230_v2 = vpop.f32.mrb[16].mxu0  ;;  %v1305_v1 = vpop.f32.mrb[16].mxu1 }
 0xafe   :  { %v1306_v59 = vadd.f32 %v1305_v1, %v1230_v2  ;;  %v1232_v60 = vpop.f32.mrb[17].mxu0  ;;  %v1307_v61 = vpop.f32.mrb[17].mxu1 }
 0xb01   :  { %v1375_v63 = vpop.f32.mrb[18].mxu0  ;;  %v1450_v3 = vpop.f32.mrb[18].mxu1 }
 0xb02   :  { %v1376_v7 = vadd.f32 %v1375_v63, %v1301_v56  ;;  %v1377_v8 = vpop.f32.mrb[19].mxu0  ;;  %v1452_v9 = vpop.f32.mrb[19].mxu1  ;;  %v1811_v56 = vld [vmem:[#allocation7 + $0xf8] sm:$0xff]  ;;  %v1813_v63 = vld [vmem:[#allocation10 + $0x18] ss:$2 sm:$0xf] }
 0xb04   :  { %v5301_v11 = vadd.f32 %v1450_v3, %v1376_v7 }
 0xb05   :  { %v1380_v13 = vpop.f32.mrb[20].mxu0  ;;  %v1455_v17 = vpop.f32.mrb[20].mxu1 }
 0xb06   :  { %v1381_v18 = vadd.f32 %v1380_v13, %v1306_v59  ;;  %v1382_v19 = vpop.f32.mrb[21].mxu0  ;;  %v1457_v20 = vpop.f32.mrb[21].mxu1 }
 0xb07   :  { %v1822_v19 = vrot.slane %v1813_v63, %v5227_v40  ;;  %v1830_v20 = vrot.slane %v1813_v63, %v5243_v15 }
 0xb08   :  { %v5307_v28 = vadd.f32 %v1455_v17, %v1381_v18  ;;  %v1818_v17 = vrot.slane %v1813_v63, %v5152_v5  ;;  %v1826_v18 = vrot.slane %v1813_v63, %v5240_v14 }
 0xb09   :  { %v1556_v29 = vpop.f32.mrb[22].mxu0  ;;  %v1633_v31 = vpop.f32.mrb[22].mxu1 }
 0xb0a   :  { %v1557_v32 = vadd.f32 %v1556_v29, %v1473_v21  ;;  %v1634_v33 = vadd.f32 %v1633_v31, %v1481_v22  ;;  %v1558_v34 = vpop.f32.mrb[23].mxu0  ;;  %v1635_v12 = vpop.f32.mrb[23].mxu1 }
 0xb0b   :  { %v1559_v0 = vadd.f32 %v1558_v34, %v1477_v23  ;;  %v1636_v37 = vadd.f32 %v1635_v12, %v1485_v25 }
 0xb0c   :  { %v1644_v35 = vmax.f32 %v1557_v32, 0.0  ;;  %v1646_v36 = vmax.f32 %v1634_v33, 0.0 }
 0xb0d   :  { %v1645_v38 = vmax.f32 %v1559_v0, 0.0  ;;  %v1647_v39 = vmax.f32 %v1636_v37, 0.0  ;;  %v1562_v43 = vpop.f32.mrb[24].mxu0  ;;  %v1639_v46 = vpop.f32.mrb[24].mxu1 }
 0xb0e   :  { %v1563_v47 = vadd.f32 %v1562_v43, %v1473_v21  ;;  %v1640_v48 = vadd.f32 %v1639_v46, %v1481_v22  ;;  %v1564_v49 = vpop.f32.mrb[25].mxu0  ;;  %v1641_v44 = vpop.f32.mrb[25].mxu1 }
 0xb0f   :  { %v1565_v42 = vadd.f32 %v1564_v49, %v1477_v23  ;;  %v1642_v50 = vadd.f32 %v1641_v44, %v1485_v25  ;;  %1716 = vmatprep.mubr.f32.mxu0 %v1645_v38  ;;  %1791 = vmatprep.mubr.f32.mxu1 %v1647_v39 }
 0xb10   :  { %1717 = vmatmul.mubr.f32.vlgmr.msra.gmra.mrb[26].mxu0 %v1644_v35  ;;  %1792 = vmatmul.mubr.f32.vlgmr.msra.gmra.mrb[26].mxu1 %v1646_v36  ;;  %v1648_v53 = vmax.f32 %v1563_v47, 0.0  ;;  %v1650_v54 = vmax.f32 %v1640_v48, 0.0 }
 0xb11   :  { %v1649_v51 = vmax.f32 %v1565_v42, 0.0  ;;  %v1651_v52 = vmax.f32 %v1642_v50, 0.0  ;;  %1836 = vmatpush1.msra.mxu0 %v1804_v45  ;;  %1913 = vmatpush1.msra.mxu1 %v1806_v41  ;;  %v2151_v41 = vsub.s32 4, %v5149_v4 }
 0xb12   :  { %1997 = vmatprep.subr.mxu0 %v1809_v55  ;;  %2072 = vmatprep.subr.mxu1 %v1811_v56 }
 0xb13   :  { %1721 = vmatprep.mubr.f32.mxu0 %v1649_v51  ;;  %1796 = vmatprep.mubr.f32.mxu1 %v1651_v52 }
 0xb14   :  { %1722 = vmatmul.mubr.f32.gmra.mrb[28].mxu0 %v1648_v53  ;;  %1797 = vmatmul.mubr.f32.gmra.mrb[28].mxu1 %v1650_v54  ;;  %v2152_v54 = vrot.slane %v5154_v6, %v2151_v41 }
 0xb15   :  { %1899 = vmatprep.mubr.f32.mxu0 %v5002_v62  ;;  %1976 = vmatprep.mubr.f32.mxu1 %v5002_v62 }
 0xb18   :  { %4524 = vmatmul.mubr.msk.f32.vlgmr.msra.gmra.mrb[30].mxu0 %vm138_vm0, %v5249_v26  ;;  %4526 = vmatmul.mubr.msk.f32.vlgmr.msra.gmra.mrb[30].mxu1 %vm138_vm0, %v5249_v26 }
 0xb19   :  { %1905 = vmatprep.mubr.f32.mxu0 %v5002_v62  ;;  %1982 = vmatprep.mubr.f32.mxu1 %v5002_v62 }
 0xb1a   :  { %1998 = vmatpush1.xpose.msra.mxu0 %v1808_v57  ;;  %2073 = vmatpush1.xpose.msra.mxu1 %v1810_v58 }
 0xb1c   :  { %4525 = vmatmul.mubr.msk.f32.gmra.mrb[32].mxu0 %vm138_vm0, %v5255_v30  ;;  %4527 = vmatmul.mubr.msk.f32.gmra.mrb[32].mxu1 %vm138_vm0, %v5255_v30 }
 0xbe3   :  { %v1718_v2 = vpop.f32.mrb[26].mxu0  ;;  %v1793_v1 = vpop.f32.mrb[26].mxu1 }
 0xbe4   :  { %v1794_v59 = vadd.f32 %v1793_v1, %v1718_v2  ;;  %v1720_v60 = vpop.f32.mrb[27].mxu0  ;;  %v1795_v61 = vpop.f32.mrb[27].mxu1 }
 0xbe6   :  { %v1802_v3 = vadd.f32 %v1794_v59, %v5301_v11 }
 0xbe7   :  { %v1723_v7 = vpop.f32.mrb[28].mxu0  ;;  %v1798_v8 = vpop.f32.mrb[28].mxu1 }
 0xbe8   :  { %v1799_v9 = vadd.f32 %v1798_v8, %v1723_v7  ;;  %v1725_v10 = vpop.f32.mrb[29].mxu0  ;;  %v1800_v13 = vpop.f32.mrb[29].mxu1 }
 0xbea   :  { %v1803_v21 = vadd.f32 %v1799_v9, %v5307_v28 }
 0xbeb   :  { %v1901_v22 = vpop.f32.mrb[30].mxu0  ;;  %v1978_v23 = vpop.f32.mrb[30].mxu1 }
 0xbec   :  { %v1902_v25 = vadd.f32 %v1901_v22, %v1818_v17  ;;  %v1979_v29 = vadd.f32 %v1978_v23, %v1826_v18  ;;  %v1903_v11 = vpop.f32.mrb[31].mxu0  ;;  %v1980_v31 = vpop.f32.mrb[31].mxu1  ;;  %v5337_v22 = vld [vmem:[#allocation5 + $0x8] sm:$0xff] }
 0xbed   :  { %v1904_v32 = vadd.f32 %v1903_v11, %v1822_v19  ;;  %v1981_v33 = vadd.f32 %v1980_v31, %v1830_v20  ;;  %4642 = vmatprep.subr.mxu0 %v5337_v22 }
 0xbee   :  { %v1989_v38 = vmax.f32 %v1902_v25, 0.0  ;;  %v1991_v39 = vmax.f32 %v1979_v29, 0.0 }
 0xbef   :  { %v1990_v34 = vmax.f32 %v1904_v32, 0.0  ;;  %v1992_v12 = vmax.f32 %v1981_v33, 0.0  ;;  %v1907_v0 = vpop.f32.mrb[32].mxu0  ;;  %v1984_v37 = vpop.f32.mrb[32].mxu1  ;;  %v2185_v32 = vsub.s32 5, %v5149_v4  ;;  %v2191_v33 = vsub.s32 6, %v5149_v4 }
 0xbf0   :  { %v1908_v43 = vadd.f32 %v1907_v0, %v1818_v17  ;;  %v1985_v46 = vadd.f32 %v1984_v37, %v1826_v18  ;;  %v1909_v35 = vpop.f32.mrb[33].mxu0  ;;  %v1986_v36 = vpop.f32.mrb[33].mxu1  ;;  %v4846_v4 = vld [vmem:[#allocation2 + $0x8] sm:$0xff] }
 0xbf1   :  { %v1910_v47 = vadd.f32 %v1909_v35, %v1822_v19  ;;  %v1987_v28 = vadd.f32 %v1986_v36, %v1830_v20  ;;  %2061 = vmatprep.mubr.f32.mxu0 %v1990_v34  ;;  %2136 = vmatprep.mubr.f32.mxu1 %v1992_v12  ;;  %v4844_v34 = vld [vmem:[#allocation8] sm:$0xff] }
 0xbf2   :  { %2062 = vmatmul.mubr.f32.vlgmr.msra.gmra.mrb[34].mxu0 %v1989_v38  ;;  %2137 = vmatmul.mubr.f32.vlgmr.msra.gmra.mrb[34].mxu1 %v1991_v39  ;;  %v1993_v44 = vmax.f32 %v1908_v43, 0.0  ;;  %v1995_v45 = vmax.f32 %v1985_v46, 0.0  ;;  %v2186_v12 = vrot.slane %v4844_v34, %v2185_v32  ;;  %v2192_v38 = vrot.slane %v4844_v34, %v2191_v33 }
 0xbf3   :  { %v1994_v48 = vmax.f32 %v1910_v47, 0.0  ;;  %v1996_v49 = vmax.f32 %v1987_v28, 0.0  ;;  %4643 = vmatpush3.msra.mxu0 %v5337_v22  ;;  %v5355_v28 = vld [vmem:[#allocation8 + $0x8] sm:$0xff] }
 0xbf5   :  { %2066 = vmatprep.mubr.f32.mxu0 %v1994_v48  ;;  %2141 = vmatprep.mubr.f32.mxu1 %v1996_v49  ;;  %v2200_v48 = vrot.slane %v5355_v28, %v5152_v5 }
 0xbf6   :  { %2067 = vmatmul.mubr.f32.gmra.mrb[36].mxu0 %v1993_v44  ;;  %2142 = vmatmul.mubr.f32.gmra.mrb[36].mxu1 %v1995_v45 }
 0xcc5   :  { %v2063_v42 = vpop.f32.mrb[34].mxu0  ;;  %v2138_v50 = vpop.f32.mrb[34].mxu1 }
 0xcc6   :  { %v2139_v51 = vadd.f32 %v2138_v50, %v2063_v42  ;;  %v2065_v52 = vpop.f32.mrb[35].mxu0  ;;  %v2140_v53 = vpop.f32.mrb[35].mxu1 }
 0xcc8   :  { %v2147_v55 = vadd.f32 %v2139_v51, %v1802_v3 }
 0xcc9   :  { %v2068_v56 = vpop.f32.mrb[36].mxu0  ;;  %v2143_v57 = vpop.f32.mrb[36].mxu1 }
 0xcca   :  { %v2144_v58 = vadd.f32 %v2143_v57, %v2068_v56  ;;  %v2070_v2 = vpop.f32.mrb[37].mxu0  ;;  %v2145_v1 = vpop.f32.mrb[37].mxu1  ;;  %v2153_v59 = vadd.f32 %v2152_v54, %v2147_v55 }
 0xccc   :  { %v2148_v60 = vadd.f32 %v2144_v58, %v1803_v21  ;;  %v2155_v61 = vadd.f32 %v2153_v59, %v5249_v26 }
 0xcce   :  { %v2157_v63 = vsel %vm138_vm0, %v2155_v61, 0.0  ;;  %v2154_v7 = vadd.f32 %v2152_v54, %v2148_v60 }
 0xccf   :  { %2158 = vadd.xlane.f32.xlu0 %v2157_v63 }
 0xcd0   :  { %v2156_v8 = vadd.f32 %v2154_v7, %v5255_v30 }
 0xcd2   :  { %v2160_v9 = vsel %vm138_vm0, %v2156_v8, 0.0 }
 0xcd3   :  { %2161 = vadd.xlane.f32.xlu1 %v2160_v9 }
 0xd5c   :  { %v2159_v6 = vpop.xlane.xlu0 %2158 }
 0xd5d   :  { %v2163_v3 = vmul.f32 0.125, %v2159_v6 }
 0xd5f   :  { %v2165_v10 = vsub.f32 %v2155_v61, %v2163_v3 }
 0xd60   :  { %v2162_v13 = vpop.xlane.xlu1 %2161 }
 0xd61   :  { %v2164_v17 = vmul.f32 0.125, %v2162_v13  ;;  %v2167_v18 = vmul.f32 %v2165_v10, %v2165_v10 }
 0xd63   :  { %v2166_v19 = vsub.f32 %v2156_v8, %v2164_v17  ;;  %v2169_v20 = vsel %vm138_vm0, %v2167_v18, 0.0 }
 0xd64   :  { %2170 = vadd.xlane.f32.xlu0 %v2169_v20 }
 0xd65   :  { %v2168_v26 = vmul.f32 %v2166_v19, %v2166_v19 }
 0xd67   :  { %v2172_v21 = vsel %vm138_vm0, %v2168_v26, 0.0 }
 0xd68   :  { %2173 = vadd.xlane.f32.xlu1 %v2172_v21 }
 0xdf1   :  { %v2171_v30 = vpop.xlane.xlu0 %2170 }
 0xdf2   :  { %v2175_v23 = vmul.f32 0.125, %v2171_v30 }
 0xdf4   :  { %v2177_v25 = vadd.f32 1e-05, %v2175_v23 }
 0xdf5   :  { %v2174_v29 = vpop.xlane.xlu1 %2173 }
 0xdf6   :  { %4816 = vrsqrt.f32 %v2177_v25  ;;  %v2176_v11 = vmul.f32 0.125, %v2174_v29 }
 0xdf8   :  { %v2178_v31 = vadd.f32 1e-05, %v2176_v11 }
 0xdfa   :  { %4818 = vrsqrt.f32 %v2178_v31 }
 0xe00   :  { %v4817_v0 = vpop.eup %4816 }
 0xe01   :  { %v2181_v37 = vmul.f32 %v4817_v0, %v2165_v10 }
 0xe03   :  { %v2187_v39 = vmul.f32 %v2186_v12, %v2181_v37 }
 0xe04   :  { %v4819_v43 = vpop.eup %4818 }
 0xe05   :  { %v2182_v46 = vmul.f32 %v4819_v43, %v2166_v19  ;;  %v5347_v35 = vadd.f32 %v2192_v38, %v2187_v39 }
 0xe07   :  { %v2188_v36 = vmul.f32 %v2186_v12, %v2182_v46  ;;  %4644 = vmatprep.mubr.msk.f32.mxu0 %vm138_vm0, %v5347_v35 }
 0xe09   :  { %v5351_v47 = vadd.f32 %v2192_v38, %v2188_v36 }
 0xe0b   :  { %4645 = vmatmul.mubr.msk.f32.vlgmr.msra.gmra.mrb[38].mxu0 %vm138_vm0, %v5351_v47 }
 0xede   :  { %v4646_v49 = vpop.f32.mrb[38].mxu0 }
 0xedf   :  { %v2279_v44 = vadd.f32 %v4646_v49, %v2200_v48  ;;  %v2273_v45 = vpop.f32.mrb[39].mxu0 }
 0xee0   :  { %v2274_v42 = vadd.f32 %v2273_v45, %v2200_v48 }
 0xee2   :  { %4651 = vmatprep.mubr.msk.f32.mxu1 %vm226_vm1, %v2274_v42  ;;  %v5360_v50 = vpack.i.bf16 %v2279_v44, %v2274_v42 }
 0xee4   :  { %4782 = vrot.lane.b32.xlu1 %v5360_v50, %s4997_s3  ;;  %4777 = vrot.lane.b32.xlu0 %v5360_v50, %s4995_s4 }
 0xee8   :  { %2484 = vrot.lane.b32.xlu1 %v2274_v42, %s4998_s21  ;;  %2486 = vrot.lane.b32.xlu0 %v2279_v44, %s4998_s21 }
 0xf56   :  { %v4783_v51 = vpop.permute.xlu1 %4782  ;;  %v4778_v52 = vpop.permute.xlu0 %4777 }
 0xf57   :  { %v4785_v53 = vunpack.i.h.bf16 %v4783_v51  ;;  %v4784_v54 = vunpack.i.l.bf16 %v4783_v51  ;;  %v4780_v55 = vunpack.i.h.bf16 %v4778_v52  ;;  %v4779_v56 = vunpack.i.l.bf16 %v4778_v52 }
 0xf59   :  { %v4700_v57 = vpack.c.bf16 %v4780_v55, %v4779_v56  ;;  %v4710_v58 = vpack.c.bf16 %v4785_v53, %v4784_v54 }
 0xf5a   :  { %v2485_v2 = vpop.permute.xlu1 %2484  ;;  %v2487_v1 = vpop.permute.xlu0 %2486 }
 0xf5b   :  { %4702 = vmatprep.subr.msk.bf16.mxu1 %vm5165_vm2, %v4700_v57 }
 0xf5c   :  { %4705 = vmatpush3.bf16.xpose.msk.msra.mxu1 %vm5165_vm2, %v4700_v57 }
 0xf5d   :  { %4712 = vmatprep.subr.msk.bf16.mxu1 %vm5165_vm2, %v4710_v58 }
 0xf63   :  { %4652 = vmatmul.mubr.msk.f32.vlgmr.msra.gmra.mrb[38].mxu1 %vm226_vm1, %v2279_v44 }
 0xf64   :  { %4715 = vmatpush3.bf16.xpose.msk.msra.mxu1 %vm5165_vm2, %v4710_v58  ;;  %4665 = vmatprep.mubr.msk.f32.mxu1 %vm226_vm1, %v2485_v2  ;;  %vm4383_vm2 = vcmask 105472  }
 0xf6b   :  { %4666 = vmatmul.mubr.msk.f32.vlgmr.msra.gmra.mrb[40].mxu1 %vm226_vm1, %v2487_v1 }
 0xf6c   :  { %2928 = vmatprep.mubr.f32.mxu1 %v5002_v62 }
0x1036   :  { %v4653_v59 = vpop.f32.mrb[38].mxu1 }
0x1037   :  { %v2372_v60 = vmul.f32 0.5, %v4653_v59  ;;  %v2362_v61 = vpop.f32.mrb[39].mxu1 }
0x1038   :  { %v2371_v63 = vmul.f32 0.5, %v2362_v61 }
0x1039   :  { %v2374_v7 = vsel %vm5176_vm3, %v2372_v60, -1e+30 }
0x103a   :  { %v2378_v8 = vsel %vm314_vm4, %v2374_v7, -inf  ;;  %v2373_v16 = vsel %vm5180_vm5, %v2371_v63, -1e+30 }
0x103b   :  { %2379 = vmax.xlane.f32.xlu0 %v2378_v8  ;;  %v2375_v9 = vsel %vm314_vm4, %v2373_v16, -inf }
0x103c   :  { %2376 = vmax.xlane.f32.xlu1 %v2375_v9 }
0x103e   :  { %v4667_v6 = vpop.f32.mrb[40].mxu1 }
0x103f   :  { %v2576_v3 = vmul.f32 0.5, %v4667_v6  ;;  %v2566_v10 = vpop.f32.mrb[41].mxu1 }
0x1040   :  { %v2575_v13 = vmul.f32 0.5, %v2566_v10 }
0x1041   :  { %v2578_v17 = vsel %vm5176_vm3, %v2576_v3, -1e+30  ;;  %vm4386_vm3 = vcmask 113664  }
0x1042   :  { %v2582_v18 = vsel %vm314_vm4, %v2578_v17, -inf  ;;  %v2577_v19 = vsel %vm5180_vm5, %v2575_v13, -1e+30  ;;  %vm4389_vm5 = vcmask 121856  }
0x1043   :  { %2583 = vmax.xlane.f32.xlu1 %v2582_v18  ;;  %v2579_v20 = vsel %vm314_vm4, %v2577_v19, -inf  ;;  %v2701_v18 = vrot.slane %v5355_v28, %v5227_v40 }
0x1044   :  { %2580 = vmax.xlane.f32.xlu0 %v2579_v20 }
0x10c8   :  { %v2380_v26 = vpop.xlane.xlu0 %2379 }
0x10c9   :  { %v2382_v21 = vsub.f32 %v2374_v7, %v2380_v26  ;;  %v2377_v30 = vpop.xlane.xlu1 %2376 }
0x10ca   :  { %v2381_v23 = vsub.f32 %v2373_v16, %v2377_v30 }
0x10cb   :  { %v2385_v25 = vmul.f32 1.442695, %v2382_v21 }
0x10cc   :  { %v2383_v29 = vmul.f32 1.442695, %v2381_v23 }
0x10cd   :  { %4820 = vpow2.f32 %v2385_v25 }
0x10ce   :  { %4822 = vpow2.f32 %v2383_v29 }
0x10d0   :  { %v2584_v11 = vpop.xlane.xlu1 %2583 }
0x10d1   :  { %v2586_v24 = vsub.f32 %v2578_v17, %v2584_v11  ;;  %v2581_v31 = vpop.xlane.xlu0 %2580 }
0x10d2   :  { %v2585_v34 = vsub.f32 %v2577_v19, %v2581_v31 }
0x10d3   :  { %v2589_v12 = vmul.f32 1.442695, %v2586_v24 }
0x10d4   :  { %v2587_v0 = vmul.f32 1.442695, %v2585_v34 }
0x10d5   :  { %4824 = vpow2.f32 %v2589_v12 }
0x10d6   :  { %4826 = vpow2.f32 %v2587_v0 }
0x10d7   :  { %v4821_v27 = vpop.eup %4820 }
0x10d8   :  { %v4823_v37 = vpop.eup %4822  ;;  %v2390_v38 = vsel %vm314_vm4, %v4821_v27, 0.0 }
0x10d9   :  { %2391 = vadd.xlane.f32.xlu1 %v2390_v38  ;;  %v2387_v39 = vsel %vm314_vm4, %v4823_v37, 0.0 }
0x10da   :  { %2388 = vadd.xlane.f32.xlu0 %v2387_v39  ;;  %v2830_v39 = vld [vmem:[#allocation7 + $0x118] sm:$0xff] }
0x10df   :  { %v4825_v43 = vpop.eup %4824 }
0x10e0   :  { %v4827_v46 = vpop.eup %4826  ;;  %v2594_v36 = vsel %vm314_vm4, %v4825_v43, 0.0 }
0x10e1   :  { %2595 = vadd.xlane.f32.xlu1 %v2594_v36  ;;  %v2591_v48 = vsel %vm314_vm4, %v4827_v46, 0.0  ;;  %v3027_v36 = vld [vmem:[#allocation7 + $0x128] sm:$0xff] }
0x10e2   :  { %2592 = vadd.xlane.f32.xlu0 %v2591_v48  ;;  %v3029_v48 = vld [vmem:[#allocation7 + $0x138] sm:$0xff] }
0x10f2   :  { %4792 = vrot.lane.b32.xlu1 %v5360_v50, %s4999_s7 }
0x10f8   :  { %4787 = vrot.lane.b32.xlu0 %v5360_v50, %s4996_s29 }
0x10fc   :  { %2703 = vrot.lane.b32.xlu0 %v5337_v22, %s5000_s8 }
0x1166   :  { %v2392_v44 = vpop.xlane.xlu1 %2391 }
0x1167   :  { %v2389_v49 = vpop.xlane.xlu0 %2388 }
0x1168   :  { %4828 = vrcp.f32 %v2389_v49 }
0x1169   :  { %4830 = vrcp.f32 %v2392_v44 }
0x116e   :  { %v2596_v45 = vpop.xlane.xlu1 %2595 }
0x116f   :  { %v2593_v42 = vpop.xlane.xlu0 %2592 }
0x1170   :  { %4832 = vrcp.f32 %v2593_v42 }
0x1171   :  { %4834 = vrcp.f32 %v2596_v45 }
0x1172   :  { %v4829_v51 = vpop.eup %4828  ;;  %v4793_v52 = vpop.permute.xlu1 %4792 }
0x1173   :  { %v4788_v53 = vpop.permute.xlu0 %4787  ;;  %v2395_v54 = vmul.f32 %v4829_v51, %v4823_v37  ;;  %v4795_v55 = vunpack.i.h.bf16 %v4793_v52  ;;  %v4794_v56 = vunpack.i.l.bf16 %v4793_v52  ;;  %v4831_v22 = vpop.eup %4830 }
0x1174   :  { %v4790_v57 = vunpack.i.h.bf16 %v4788_v53  ;;  %v4789_v58 = vunpack.i.l.bf16 %v4788_v53  ;;  %v2396_v59 = vmul.f32 %v4831_v22, %v4821_v27  ;;  %v2818_v53 = vrot.slane %v5355_v28, %v5240_v14 }
0x1175   :  { %4658 = vmatprep.mubr.msk.f32.mxu0 %vm314_vm4, %v2395_v54  ;;  %v4716_v2 = vpack.c.bf16 %v4795_v55, %v4794_v56  ;;  %v2824_v55 = vrot.slane %v5355_v28, %v5243_v15 }
0x1176   :  { %v4706_v50 = vpack.c.bf16 %v4790_v57, %v4789_v58 }
0x1177   :  { %v2704_v7 = vpop.permute.xlu0 %2703 }
0x1178   :  { %4707 = vmatprep.subr.bf16.mxu0 %v4706_v50 }
0x1179   :  { %4709 = vmatpush3.bf16.msra.mxu0 %v4706_v50 }
0x117a   :  { %v4833_v1 = vpop.eup %4832  ;;  %4717 = vmatprep.subr.bf16.mxu0 %v4716_v2 }
0x117b   :  { %v4835_v60 = vpop.eup %4834  ;;  %v2599_v61 = vmul.f32 %v4833_v1, %v4827_v46  ;;  %v2829_v46 = vld [vmem:[#allocation7 + $0x110] sm:$0xff] }
0x117c   :  { %4659 = vmatmul.mubr.msk.f32.vlgmr.msra.gmra.mrb[40].mxu0 %vm314_vm4, %v2396_v59  ;;  %v2600_v63 = vmul.f32 %v4835_v60, %v4825_v43  ;;  %v2827_v43 = vld [vmem:[#allocation7 + $0x100] sm:$0xff]  ;;  %v3028_v1 = vld [vmem:[#allocation7 + $0x130] sm:$0xff] }
0x117d   :  { %4719 = vmatpush3.bf16.msra.mxu0 %v4716_v2  ;;  %4672 = vmatprep.mubr.msk.f32.mxu0 %vm314_vm4, %v2599_v61  ;;  %v3026_v2 = vld [vmem:[#allocation7 + $0x120] sm:$0xff]  ;;  %v3031_v61 = vld [vmem:[#allocation7 + $0x1a8] sm:$0xff] }
0x117e   :  { %4675 = vmatprep.subr.mxu0 %v2704_v7 }
0x1180   :  { %4673 = vmatmul.mubr.msk.f32.vlgmr.msra.gmra.mrb[42].mxu0 %vm314_vm4, %v2600_v63  ;;  %v3033_v63 = vld [vmem:[#allocation7 + $0x1b8] sm:$0xff] }
0x1181   :  { %4676 = vmatpush3.msra.mxu0 %v2704_v7  ;;  %v3030_v7 = vld [vmem:[#allocation7 + $0x1a0] sm:$0xff] }
0x1182   :  { %2941 = vmatprep.subr.mxu0 %v2830_v39 }
0x124f   :  { %v4660_v8 = vpop.f32.mrb[40].mxu0 }
0x1250   :  { %v2475_v16 = vpop.f32.mrb[41].mxu0 }
0x1253   :  { %v4674_v9 = vpop.f32.mrb[42].mxu0 }
0x1254   :  { %v2679_v6 = vpop.f32.mrb[43].mxu0 }
0x1255   :  { %2690 = vrot.lane.b32.xlu1 %v2679_v6, %s5001_s9 }
0x1259   :  { %2692 = vrot.lane.b32.xlu1 %v4674_v9, %s5001_s9  ;;  %v2834_v9 = vld [vmem:[#allocation7 + $0x198] sm:$0xff] }
0x12c7   :  { %v2691_v3 = vpop.permute.xlu1 %2690 }
0x12c8   :  { %v2696_v10 = vsel %vm226_vm1, %v2475_v16, %v2691_v3  ;;  %v2832_v16 = vld [vmem:[#allocation7 + $0x188] sm:$0xff] }
0x12c9   :  { %4677 = vmatprep.mubr.msk.f32.mxu0 %vm138_vm0, %v2696_v10 }
0x12cb   :  { %v2693_v13 = vpop.permute.xlu1 %2692 }
0x12cc   :  { %v2697_v17 = vsel %vm226_vm1, %v4660_v8, %v2693_v13  ;;  %v3032_v8 = vld [vmem:[#allocation7 + $0x1b0] sm:$0xff] }
0x12cd   :  { %4678 = vmatmul.mubr.msk.f32.vlgmr.msra.gmra.mrb[44].mxu0 %vm138_vm0, %v2697_v17  ;;  %v3035_v17 = vld [vmem:[#allocation10 + $0x9] ss:$2 sm:$0xf] }
0x12ce   :  { %3005 = vmatprep.mubr.f32.mxu0 %v5002_v62  ;;  %2942 = vmatpush1.msra.mxu0 %v2829_v46 }
0x12cf   :  { %3134 = vmatprep.subr.mxu0 %v3029_v48 }
0x13a0   :  { %v4679_v19 = vpop.f32.mrb[44].mxu0 }
0x13a1   :  { %v2784_v20 = vadd.f32 %v4679_v19, %v2701_v18  ;;  %v2778_v26 = vpop.f32.mrb[45].mxu0 }
0x13a2   :  { %v2779_v21 = vadd.f32 %v2778_v26, %v2701_v18 }
0x13a3   :  { %v2788_v30 = vadd.f32 %v2784_v20, %v5351_v47  ;;  %v2836_v20 = vld [vmem:[#allocation10 + $0x1] ss:$2 sm:$0xf] }
0x13a4   :  { %v2787_v23 = vadd.f32 %v2779_v21, %v5347_v35  ;;  %v2828_v35 = vld [vmem:[#allocation7 + $0x108] sm:$0xff]  ;;  %v2849_v39 = vrot.slane %v2836_v20, %v5240_v14 }
0x13a5   :  { %v2792_v25 = vsel %vm138_vm0, %v2788_v30, 0.0  ;;  %2864 = vmatprep.subr.mxu1 %v2828_v35  ;;  %v2841_v35 = vrot.slane %v2836_v20, %v5152_v5 }
0x13a6   :  { %2793 = vadd.xlane.f32.xlu1 %v2792_v25  ;;  %v2789_v29 = vsel %vm138_vm0, %v2787_v23, 0.0  ;;  %2865 = vmatpush1.msra.mxu1 %v2827_v43  ;;  %v3044_v25 = vrot.slane %v3035_v17, %v5227_v40 }
0x13a7   :  { %2790 = vadd.xlane.f32.xlu0 %v2789_v29  ;;  %3057 = vmatprep.subr.mxu1 %v3027_v36  ;;  %v3052_v29 = vrot.slane %v3035_v17, %v5243_v15 }
0x1433   :  { %v2794_v11 = vpop.xlane.xlu1 %2793 }
0x1434   :  { %v2796_v24 = vmul.f32 0.125, %v2794_v11  ;;  %v2791_v31 = vpop.xlane.xlu0 %2790  ;;  %v2845_v11 = vrot.slane %v2836_v20, %v5227_v40 }
0x1435   :  { %v2795_v34 = vmul.f32 0.125, %v2791_v31 }
0x1436   :  { %v2798_v12 = vsub.f32 %v2788_v30, %v2796_v24  ;;  %v3040_v30 = vrot.slane %v3035_v17, %v5152_v5 }
0x1437   :  { %v2797_v0 = vsub.f32 %v2787_v23, %v2795_v34  ;;  %v3048_v23 = vrot.slane %v3035_v17, %v5240_v14 }
0x1438   :  { %v2800_v38 = vmul.f32 %v2798_v12, %v2798_v12 }
0x1439   :  { %v2799_v27 = vmul.f32 %v2797_v0, %v2797_v0 }
0x143a   :  { %v2804_v47 = vsel %vm138_vm0, %v2800_v38, 0.0 }
0x143b   :  { %v2801_v37 = vsel %vm138_vm0, %v2799_v27, 0.0 }
0x143c   :  { %2802 = vadd.xlane.f32.xlu0 %v2801_v37  ;;  %v2853_v37 = vrot.slane %v2836_v20, %v5243_v15 }
0x1440   :  { %2805 = vadd.xlane.f32.xlu0 %v2804_v47 }
0x14c9   :  { %v2803_v49 = vpop.xlane.xlu0 %2802 }
0x14ca   :  { %v2807_v44 = vmul.f32 0.125, %v2803_v49 }
0x14cc   :  { %v2809_v45 = vadd.f32 1e-05, %v2807_v44 }
0x14cd   :  { %v2806_v42 = vpop.xlane.xlu0 %2805 }
0x14ce   :  { %4836 = vrsqrt.f32 %v2809_v45  ;;  %v2808_v51 = vmul.f32 0.125, %v2806_v42 }
0x14d0   :  { %v2810_v52 = vadd.f32 1e-05, %v2808_v51 }
0x14d2   :  { %4838 = vrsqrt.f32 %v2810_v52 }
0x14d8   :  { %v4837_v54 = vpop.eup %4836 }
0x14d9   :  { %v2813_v56 = vmul.f32 %v4837_v54, %v2797_v0  ;;  %v2831_v54 = vld [vmem:[#allocation7 + $0x180] sm:$0xff] }
0x14db   :  { %v2819_v57 = vmul.f32 %v2818_v53, %v2813_v56 }
0x14dc   :  { %v4839_v58 = vpop.eup %4838 }
0x14dd   :  { %v5425_v50 = vadd.f32 %v2824_v55, %v2819_v57  ;;  %v2814_v22 = vmul.f32 %v4839_v58, %v2798_v12 }
0x14df   :  { %v2820_v59 = vmul.f32 %v2818_v53, %v2814_v22  ;;  %4544 = vmatmul.mubr.msk.f32.vlgmr.msra.gmra.mrb[42].mxu1 %vm138_vm0, %v5425_v50  ;;  %4546 = vmatmul.mubr.msk.f32.vlgmr.msra.gmra.mrb[46].mxu0 %vm138_vm0, %v5425_v50  ;;  %v3520_v22 = vld [vmem:[#allocation7 + $0x148] sm:$0xff] }
0x14e0   :  { %3058 = vmatpush1.msra.mxu1 %v3026_v2  ;;  %3135 = vmatpush1.msra.mxu0 %v3028_v1  ;;  %v3522_v2 = vld [vmem:[#allocation7 + $0x158] sm:$0xff] }
0x14e1   :  { %v5431_v60 = vadd.f32 %v2824_v55, %v2820_v59  ;;  %2934 = vmatprep.mubr.f32.mxu1 %v5002_v62  ;;  %3011 = vmatprep.mubr.f32.mxu0 %v5002_v62  ;;  %v2833_v55 = vld [vmem:[#allocation7 + $0x190] sm:$0xff] }
0x14e2   :  { %3219 = vmatprep.subr.mxu1 %v3031_v61  ;;  %3294 = vmatprep.subr.mxu0 %v3033_v63 }
0x14e3   :  { %4545 = vmatmul.mubr.msk.f32.gmra.mrb[44].mxu1 %vm138_vm0, %v5431_v60  ;;  %4547 = vmatmul.mubr.msk.f32.gmra.mrb[48].mxu0 %vm138_vm0, %v5431_v60 }
0x14e4   :  { %3121 = vmatprep.mubr.f32.mxu1 %v5002_v62  ;;  %3198 = vmatprep.mubr.f32.mxu0 %v5002_v62 }
0x14e7   :  { %4548 = vmatmul.mubr.msk.f32.vlgmr.msra.gmra.mrb[46].mxu1 %vm138_vm0, %v5425_v50  ;;  %4550 = vmatmul.mubr.msk.f32.vlgmr.msra.gmra.mrb[50].mxu0 %vm138_vm0, %v5425_v50 }
0x14e8   :  { %3127 = vmatprep.mubr.f32.mxu1 %v5002_v62  ;;  %3204 = vmatprep.mubr.f32.mxu0 %v5002_v62 }
0x14e9   :  { %3220 = vmatpush1.xpose.msra.mxu1 %v3030_v7  ;;  %3295 = vmatpush1.xpose.msra.mxu0 %v3032_v8 }
0x14ea   :  { %3369 = vmatprep.subr.mxu1 %v2832_v16  ;;  %3444 = vmatprep.subr.mxu0 %v2834_v9 }
0x14eb   :  { %4549 = vmatmul.mubr.msk.f32.gmra.mrb[48].mxu1 %vm138_vm0, %v5431_v60  ;;  %4551 = vmatmul.mubr.msk.f32.gmra.mrb[52].mxu0 %vm138_vm0, %v5431_v60 }
0x15b2   :  { %v2930_v6 = vpop.f32.mrb[42].mxu1  ;;  %v3007_v3 = vpop.f32.mrb[46].mxu0 }
0x15b3   :  { %v2932_v10 = vpop.f32.mrb[43].mxu1  ;;  %v3009_v13 = vpop.f32.mrb[47].mxu0  ;;  %v2931_v61 = vadd.f32 %v2930_v6, %v2841_v35  ;;  %v3008_v63 = vadd.f32 %v3007_v3, %v2849_v39 }
0x15b4   :  { %v2933_v43 = vadd.f32 %v2932_v10, %v2845_v11  ;;  %v3010_v56 = vadd.f32 %v3009_v13, %v2853_v37 }
0x15b5   :  { %v3018_v17 = vmax.f32 %v2931_v61, 0.0  ;;  %v3020_v20 = vmax.f32 %v3008_v63, 0.0 }
0x15b6   :  { %v5451_v18 = vpop.f32.mrb[44].mxu1  ;;  %v5453_v19 = vpop.f32.mrb[48].mxu0  ;;  %v3019_v16 = vmax.f32 %v2933_v43, 0.0  ;;  %v3021_v9 = vmax.f32 %v3010_v56, 0.0 }
0x15b7   :  { %v2938_v26 = vpop.f32.mrb[45].mxu1  ;;  %v3015_v21 = vpop.f32.mrb[49].mxu0  ;;  %v3014_v6 = vadd.f32 %v5453_v19, %v2849_v39  ;;  %v3526_v19 = vld [vmem:[#allocation7 + $0x1d8] sm:$0xff] }
0x15b8   :  { %v2939_v10 = vadd.f32 %v2938_v26, %v2845_v11  ;;  %v3016_v13 = vadd.f32 %v3015_v21, %v2853_v37  ;;  %v3523_v11 = vld [vmem:[#allocation7 + $0x1c0] sm:$0xff] }
0x15b9   :  { %v3024_v21 = vmax.f32 %v3014_v6, 0.0 }
0x15ba   :  { %v3123_v24 = vpop.f32.mrb[46].mxu1  ;;  %v3200_v31 = vpop.f32.mrb[50].mxu0  ;;  %v3023_v3 = vmax.f32 %v2939_v10, 0.0 }
0x15bb   :  { %v3124_v34 = vadd.f32 %v3123_v24, %v3040_v30  ;;  %v3201_v12 = vadd.f32 %v3200_v31, %v3048_v23  ;;  %v3125_v0 = vpop.f32.mrb[47].mxu1  ;;  %v3202_v27 = vpop.f32.mrb[51].mxu0  ;;  %v3525_v24 = vld [vmem:[#allocation7 + $0x1d0] sm:$0xff]  ;;  %v3865_v31 = vld [vmem:[#allocation7 + $0x168] sm:$0xff] }
0x15bc   :  { %v3126_v38 = vadd.f32 %v3125_v0, %v3044_v25  ;;  %v3203_v47 = vadd.f32 %v3202_v27, %v3052_v29 }
0x15bd   :  { %v3211_v44 = vmax.f32 %v3124_v34, 0.0  ;;  %v3213_v45 = vmax.f32 %v3201_v12, 0.0  ;;  %v3867_v34 = vld [vmem:[#allocation7 + $0x178] sm:$0xff] }
0x15be   :  { %v3212_v46 = vmax.f32 %v3126_v38, 0.0  ;;  %v3214_v36 = vmax.f32 %v3203_v47, 0.0  ;;  %v3129_v48 = vpop.f32.mrb[48].mxu1  ;;  %v3206_v49 = vpop.f32.mrb[52].mxu0 }
0x15bf   :  { %v3130_v42 = vadd.f32 %v3129_v48, %v3040_v30  ;;  %v3207_v51 = vadd.f32 %v3206_v49, %v3048_v23  ;;  %v3131_v52 = vpop.f32.mrb[49].mxu1  ;;  %v3208_v53 = vpop.f32.mrb[53].mxu0  ;;  %v2937_v30 = vadd.f32 %v5451_v18, %v2841_v35  ;;  %v3025_v23 = vmax.f32 %v3016_v13, 0.0  ;;  %v3524_v18 = vld [vmem:[#allocation7 + $0x1c8] sm:$0xff] }
0x15c0   :  { %v3132_v57 = vadd.f32 %v3131_v52, %v3044_v25  ;;  %v3209_v58 = vadd.f32 %v3208_v53, %v3052_v29  ;;  %3283 = vmatprep.mubr.f32.mxu1 %v3212_v46  ;;  %3358 = vmatprep.mubr.f32.mxu0 %v3214_v36  ;;  %v3519_v25 = vld [vmem:[#allocation7 + $0x140] sm:$0xff]  ;;  %v3521_v29 = vld [vmem:[#allocation7 + $0x150] sm:$0xff] }
0x15c1   :  { %3284 = vmatmul.mubr.f32.vlgmr.msra.gmra.mrb[50].mxu1 %v3211_v44  ;;  %3359 = vmatmul.mubr.f32.vlgmr.msra.gmra.mrb[54].mxu0 %v3213_v45  ;;  %v3215_v7 = vmax.f32 %v3130_v42, 0.0  ;;  %v3217_v8 = vmax.f32 %v3207_v51, 0.0  ;;  %v3022_v26 = vmax.f32 %v2937_v30, 0.0  ;;  %v3528_v42 = vld [vmem:[#allocation10 + $0x11] ss:$2 sm:$0xf] }
0x15c2   :  { %v3216_v1 = vmax.f32 %v3132_v57, 0.0  ;;  %v3218_v59 = vmax.f32 %v3209_v58, 0.0  ;;  %3370 = vmatpush1.xpose.msra.mxu1 %v2831_v54  ;;  %3445 = vmatpush1.xpose.msra.mxu0 %v2833_v55  ;;  %v3533_v57 = vrot.slane %v3528_v42, %v5152_v5  ;;  %v3541_v58 = vrot.slane %v3528_v42, %v5240_v14 }
0x15c3   :  { %3550 = vmatprep.subr.mxu1 %v3520_v22  ;;  %3627 = vmatprep.subr.mxu0 %v3522_v2  ;;  %v3537_v22 = vrot.slane %v3528_v42, %v5227_v40  ;;  %v3545_v2 = vrot.slane %v3528_v42, %v5243_v15 }
0x15c4   :  { %3288 = vmatprep.mubr.f32.mxu1 %v3216_v1  ;;  %3363 = vmatprep.mubr.f32.mxu0 %v3218_v59 }
0x15c5   :  { %3289 = vmatmul.mubr.f32.gmra.mrb[52].mxu1 %v3215_v7  ;;  %3364 = vmatmul.mubr.f32.gmra.mrb[56].mxu0 %v3217_v8 }
0x15c6   :  { %3433 = vmatprep.mubr.f32.mxu1 %v3019_v16  ;;  %3508 = vmatprep.mubr.f32.mxu0 %v3021_v9 }
0x15c9   :  { %3434 = vmatmul.mubr.f32.vlgmr.msra.gmra.mrb[54].mxu1 %v3018_v17  ;;  %3509 = vmatmul.mubr.f32.vlgmr.msra.gmra.mrb[58].mxu0 %v3020_v20 }
0x15ca   :  { %3438 = vmatprep.mubr.f32.mxu1 %v3023_v3  ;;  %3513 = vmatprep.mubr.f32.mxu0 %v3025_v23 }
0x15cb   :  { %3551 = vmatpush1.msra.mxu1 %v3519_v25  ;;  %3628 = vmatpush1.msra.mxu0 %v3521_v29 }
0x15cc   :  { %3712 = vmatprep.subr.mxu1 %v3524_v18  ;;  %3787 = vmatprep.subr.mxu0 %v3526_v19  ;;  %v3866_v18 = vld [vmem:[#allocation7 + $0x170] sm:$0xff] }
0x15cd   :  { %3439 = vmatmul.mubr.f32.gmra.mrb[56].mxu1 %v3022_v26  ;;  %3514 = vmatmul.mubr.f32.gmra.mrb[60].mxu0 %v3024_v21  ;;  %v3864_v21 = vld [vmem:[#allocation7 + $0x160] sm:$0xff] }
0x15ce   :  { %3614 = vmatprep.mubr.f32.mxu1 %v5002_v62  ;;  %3691 = vmatprep.mubr.f32.mxu0 %v5002_v62 }
0x15d1   :  { %4552 = vmatmul.mubr.msk.f32.vlgmr.msra.gmra.mrb[58].mxu1 %vm138_vm0, %v5425_v50  ;;  %4554 = vmatmul.mubr.msk.f32.vlgmr.msra.gmra.mrb[62].mxu0 %vm138_vm0, %v5425_v50 }
0x15d2   :  { %3620 = vmatprep.mubr.f32.mxu1 %v5002_v62  ;;  %3697 = vmatprep.mubr.f32.mxu0 %v5002_v62 }
0x15d3   :  { %3713 = vmatpush1.xpose.msra.mxu1 %v3523_v11  ;;  %3788 = vmatpush1.xpose.msra.mxu0 %v3525_v24 }
0x15d4   :  { %3895 = vmatprep.subr.mxu1 %v3865_v31  ;;  %3972 = vmatprep.subr.mxu0 %v3867_v34 }
0x15d5   :  { %4553 = vmatmul.mubr.msk.f32.gmra.mrb[60].mxu1 %vm138_vm0, %v5431_v60  ;;  %4555 = vmatmul.mubr.msk.f32.gmra.mrb[64].mxu0 %vm138_vm0, %v5431_v60 }
0x1694   :  { %v3285_v12 = vpop.f32.mrb[50].mxu1  ;;  %v3360_v0 = vpop.f32.mrb[54].mxu0 }
0x1695   :  { %v3361_v27 = vadd.f32 %v3360_v0, %v3285_v12  ;;  %v3287_v37 = vpop.f32.mrb[51].mxu1  ;;  %v3362_v38 = vpop.f32.mrb[55].mxu0  ;;  %v3869_v0 = vld [vmem:[#allocation7 + $0x1e8] sm:$0xff] }
0x1696   :  { %v3868_v37 = vld [vmem:[#allocation7 + $0x1e0] sm:$0xff]  ;;  %v3870_v38 = vld [vmem:[#allocation7 + $0x1f0] sm:$0xff] }
0x1698   :  { %v3290_v47 = vpop.f32.mrb[52].mxu1  ;;  %v3365_v35 = vpop.f32.mrb[56].mxu0 }
0x1699   :  { %v3366_v39 = vadd.f32 %v3365_v35, %v3290_v47  ;;  %v3292_v43 = vpop.f32.mrb[53].mxu1  ;;  %v3367_v46 = vpop.f32.mrb[57].mxu0 }
0x169c   :  { %v3435_v36 = vpop.f32.mrb[54].mxu1  ;;  %v3510_v48 = vpop.f32.mrb[58].mxu0 }
0x169d   :  { %v3436_v49 = vadd.f32 %v3435_v36, %v3361_v27  ;;  %v3437_v44 = vpop.f32.mrb[55].mxu1  ;;  %v3512_v45 = vpop.f32.mrb[59].mxu0  ;;  %v3871_v27 = vld [vmem:[#allocation7 + $0x1f8] sm:$0xff] }
0x169f   :  { %v5477_v51 = vadd.f32 %v3510_v48, %v3436_v49 }
0x16a0   :  { %v3440_v52 = vpop.f32.mrb[56].mxu1  ;;  %v3515_v53 = vpop.f32.mrb[60].mxu0 }
0x16a1   :  { %v3441_v54 = vadd.f32 %v3440_v52, %v3366_v39  ;;  %v3442_v55 = vpop.f32.mrb[57].mxu1  ;;  %v3517_v56 = vpop.f32.mrb[61].mxu0 }
0x16a3   :  { %v5483_v1 = vadd.f32 %v3515_v53, %v3441_v54 }
0x16a4   :  { %v3616_v59 = vpop.f32.mrb[58].mxu1  ;;  %v3693_v61 = vpop.f32.mrb[62].mxu0 }
0x16a5   :  { %v3617_v63 = vadd.f32 %v3616_v59, %v3533_v57  ;;  %v3694_v7 = vadd.f32 %v3693_v61, %v3541_v58  ;;  %v3618_v8 = vpop.f32.mrb[59].mxu1  ;;  %v3695_v16 = vpop.f32.mrb[63].mxu0 }
0x16a6   :  { %v3619_v9 = vadd.f32 %v3618_v8, %v3537_v22  ;;  %v3696_v10 = vadd.f32 %v3695_v16, %v3545_v2 }
0x16a7   :  { %v3704_v6 = vmax.f32 %v3617_v63, 0.0  ;;  %v3706_v3 = vmax.f32 %v3694_v7, 0.0 }
0x16a8   :  { %v3705_v13 = vmax.f32 %v3619_v9, 0.0  ;;  %v3707_v17 = vmax.f32 %v3696_v10, 0.0  ;;  %v3622_v20 = vpop.f32.mrb[60].mxu1  ;;  %v3699_v30 = vpop.f32.mrb[64].mxu0 }
0x16a9   :  { %v3623_v23 = vadd.f32 %v3622_v20, %v3533_v57  ;;  %v3700_v25 = vadd.f32 %v3699_v30, %v3541_v58  ;;  %v3624_v29 = vpop.f32.mrb[61].mxu1  ;;  %v3701_v26 = vpop.f32.mrb[65].mxu0 }
0x16aa   :  { %v3625_v19 = vadd.f32 %v3624_v29, %v3537_v22  ;;  %v3702_v11 = vadd.f32 %v3701_v26, %v3545_v2  ;;  %3776 = vmatprep.mubr.f32.mxu1 %v3705_v13  ;;  %3851 = vmatprep.mubr.f32.mxu0 %v3707_v17 }
0x16ab   :  { %3777 = vmatmul.mubr.f32.vlgmr.msra.gmra.mrb[62].mxu1 %v3704_v6  ;;  %3852 = vmatmul.mubr.f32.vlgmr.msra.gmra.mrb[66].mxu0 %v3706_v3  ;;  %v3708_v34 = vmax.f32 %v3623_v23, 0.0  ;;  %v3710_v12 = vmax.f32 %v3700_v25, 0.0 }
0x16ac   :  { %v3709_v24 = vmax.f32 %v3625_v19, 0.0  ;;  %v3711_v31 = vmax.f32 %v3702_v11, 0.0  ;;  %3896 = vmatpush1.msra.mxu1 %v3864_v21  ;;  %3973 = vmatpush1.msra.mxu0 %v3866_v18  ;;  %v4212_v18 = vrot.slane %v5355_v28, %v2151_v41 }
0x16ad   :  { %4057 = vmatprep.subr.mxu1 %v3869_v0  ;;  %4132 = vmatprep.subr.mxu0 %v3871_v27 }
0x16ae   :  { %3781 = vmatprep.mubr.f32.mxu1 %v3709_v24  ;;  %3856 = vmatprep.mubr.f32.mxu0 %v3711_v31 }
0x16af   :  { %3782 = vmatmul.mubr.f32.gmra.mrb[64].mxu1 %v3708_v34  ;;  %3857 = vmatmul.mubr.f32.gmra.mrb[68].mxu0 %v3710_v12 }
0x16b0   :  { %3959 = vmatprep.mubr.f32.mxu1 %v5002_v62  ;;  %4036 = vmatprep.mubr.f32.mxu0 %v5002_v62 }
0x16b3   :  { %4556 = vmatmul.mubr.msk.f32.vlgmr.msra.gmra.mrb[66].mxu1 %vm138_vm0, %v5425_v50  ;;  %4558 = vmatmul.mubr.msk.f32.vlgmr.msra.gmra.mrb[70].mxu0 %vm138_vm0, %v5425_v50 }
0x16b4   :  { %3965 = vmatprep.mubr.f32.mxu1 %v5002_v62  ;;  %4042 = vmatprep.mubr.f32.mxu0 %v5002_v62  ;;  %v3873_v62 = vld [vmem:[#allocation10 + $0x19] ss:$2 sm:$0xf] }
0x16b5   :  { %4058 = vmatpush1.xpose.msra.mxu1 %v3868_v37  ;;  %4133 = vmatpush1.xpose.msra.mxu0 %v3870_v38  ;;  %v3878_v52 = vrot.slane %v3873_v62, %v5152_v5  ;;  %v3886_v53 = vrot.slane %v3873_v62, %v5240_v14  ;;  %v3882_v54 = vrot.slane %v3873_v62, %v5227_v40 }
0x16b6   :  { %v3890_v55 = vrot.slane %v3873_v62, %v5243_v15 }
0x16b7   :  { %4557 = vmatmul.mubr.msk.f32.gmra.mrb[68].mxu1 %vm138_vm0, %v5431_v60  ;;  %4559 = vmatmul.mubr.msk.f32.gmra.mrb[72].mxu0 %vm138_vm0, %v5431_v60 }
0x177e   :  { %v3778_v47 = vpop.f32.mrb[62].mxu1  ;;  %v3853_v35 = vpop.f32.mrb[66].mxu0 }
0x177f   :  { %v3854_v39 = vadd.f32 %v3853_v35, %v3778_v47  ;;  %v3780_v43 = vpop.f32.mrb[63].mxu1  ;;  %v3855_v46 = vpop.f32.mrb[67].mxu0 }
0x1781   :  { %v3862_v36 = vadd.f32 %v3854_v39, %v5477_v51 }
0x1782   :  { %v3783_v48 = vpop.f32.mrb[64].mxu1  ;;  %v3858_v49 = vpop.f32.mrb[68].mxu0 }
0x1783   :  { %v3859_v44 = vadd.f32 %v3858_v49, %v3783_v48  ;;  %v3785_v45 = vpop.f32.mrb[65].mxu1  ;;  %v3860_v42 = vpop.f32.mrb[69].mxu0 }
0x1785   :  { %v3863_v56 = vadd.f32 %v3859_v44, %v5483_v1 }
0x1786   :  { %v3961_v57 = vpop.f32.mrb[66].mxu1  ;;  %v4038_v58 = vpop.f32.mrb[70].mxu0 }
0x1787   :  { %v3962_v22 = vadd.f32 %v3961_v57, %v3878_v52  ;;  %v4039_v2 = vadd.f32 %v4038_v58, %v3886_v53  ;;  %v3963_v51 = vpop.f32.mrb[67].mxu1  ;;  %v4040_v59 = vpop.f32.mrb[71].mxu0  ;;  %v4252_v58 = vrot.slane %v5355_v28, %v2191_v33 }
0x1788   :  { %v3964_v61 = vadd.f32 %v3963_v51, %v3882_v54  ;;  %v4041_v63 = vadd.f32 %v4040_v59, %v3890_v55 }
0x1789   :  { %v4049_v9 = vmax.f32 %v3962_v22, 0.0  ;;  %v4051_v14 = vmax.f32 %v4039_v2, 0.0 }
0x178a   :  { %v4050_v7 = vmax.f32 %v3964_v61, 0.0  ;;  %v4052_v8 = vmax.f32 %v4041_v63, 0.0  ;;  %v3967_v16 = vpop.f32.mrb[68].mxu1  ;;  %v4044_v5 = vpop.f32.mrb[72].mxu0  ;;  %v4845_v63 = vld [vmem:[#allocation2] sm:$0xff] }
0x178b   :  { %v3968_v10 = vadd.f32 %v3967_v16, %v3878_v52  ;;  %v4045_v40 = vadd.f32 %v4044_v5, %v3886_v53  ;;  %v3969_v13 = vpop.f32.mrb[69].mxu1  ;;  %v4046_v15 = vpop.f32.mrb[73].mxu0 }
0x178c   :  { %v3970_v17 = vadd.f32 %v3969_v13, %v3882_v54  ;;  %v4047_v1 = vadd.f32 %v4046_v15, %v3890_v55  ;;  %4121 = vmatprep.mubr.f32.mxu1 %v4050_v7  ;;  %4196 = vmatprep.mubr.f32.mxu0 %v4052_v8 }
0x178d   :  { %4122 = vmatmul.mubr.f32.vlgmr.msra.gmra.mrb[70].mxu1 %v4049_v9  ;;  %4197 = vmatmul.mubr.f32.vlgmr.msra.gmra.mrb[74].mxu0 %v4051_v14  ;;  %v4053_v6 = vmax.f32 %v3968_v10, 0.0  ;;  %v4055_v3 = vmax.f32 %v4045_v40, 0.0 }
0x178e   :  { %v4054_v20 = vmax.f32 %v3970_v17, 0.0  ;;  %v4056_v30 = vmax.f32 %v4047_v1, 0.0 }
0x1790   :  { %4126 = vmatprep.mubr.f32.mxu1 %v4054_v20  ;;  %4201 = vmatprep.mubr.f32.mxu0 %v4056_v30 }
0x1791   :  { %4127 = vmatmul.mubr.f32.gmra.mrb[72].mxu1 %v4053_v6  ;;  %4202 = vmatmul.mubr.f32.gmra.mrb[76].mxu0 %v4055_v3 }
0x1860   :  { %v4123_v23 = vpop.f32.mrb[70].mxu1  ;;  %v4198_v25 = vpop.f32.mrb[74].mxu0 }
0x1861   :  { %v4199_v29 = vadd.f32 %v4198_v25, %v4123_v23  ;;  %v4125_v26 = vpop.f32.mrb[71].mxu1  ;;  %v4200_v21 = vpop.f32.mrb[75].mxu0 }
0x1863   :  { %v4207_v19 = vadd.f32 %v4199_v29, %v3862_v36 }
0x1864   :  { %v4128_v11 = vpop.f32.mrb[72].mxu1  ;;  %v4203_v24 = vpop.f32.mrb[76].mxu0 }
0x1865   :  { %v4204_v31 = vadd.f32 %v4203_v24, %v4128_v11  ;;  %v4130_v34 = vpop.f32.mrb[73].mxu1  ;;  %v4205_v12 = vpop.f32.mrb[77].mxu0  ;;  %v4213_v0 = vadd.f32 %v4212_v18, %v4207_v19 }
0x1867   :  { %v4208_v27 = vadd.f32 %v4204_v31, %v3863_v56  ;;  %v4215_v37 = vadd.f32 %v4213_v0, %v5425_v50  ;;  %v4246_v56 = vrot.slane %v5355_v28, %v2185_v32 }
0x1869   :  { %v4217_v38 = vsel %vm138_vm0, %v4215_v37, 0.0  ;;  %v4214_v47 = vadd.f32 %v4212_v18, %v4208_v27 }
0x186a   :  { %4218 = vadd.xlane.f32.xlu1 %v4217_v38 }
0x186b   :  { %v4216_v35 = vadd.f32 %v4214_v47, %v5431_v60 }
0x186d   :  { %v4220_v39 = vsel %vm138_vm0, %v4216_v35, 0.0 }
0x186e   :  { %4221 = vadd.xlane.f32.xlu0 %v4220_v39 }
0x18f7   :  { %v4219_v41 = vpop.xlane.xlu1 %4218 }
0x18f8   :  { %v4223_v43 = vmul.f32 0.125, %v4219_v41 }
0x18fa   :  { %v4225_v46 = vsub.f32 %v4215_v37, %v4223_v43 }
0x18fb   :  { %v4222_v62 = vpop.xlane.xlu0 %4221 }
0x18fc   :  { %v4224_v36 = vmul.f32 0.125, %v4222_v62  ;;  %v4227_v48 = vmul.f32 %v4225_v46, %v4225_v46 }
0x18fe   :  { %v4226_v49 = vsub.f32 %v4216_v35, %v4224_v36  ;;  %v4229_v44 = vsel %vm138_vm0, %v4227_v48, 0.0 }
0x18ff   :  { %4230 = vadd.xlane.f32.xlu1 %v4229_v44 }
0x1900   :  { %v4228_v50 = vmul.f32 %v4226_v49, %v4226_v49 }
0x1902   :  { %v4232_v45 = vsel %vm138_vm0, %v4228_v50, 0.0 }
0x1903   :  { %4233 = vadd.xlane.f32.xlu0 %v4232_v45 }
0x198c   :  { %v4231_v42 = vpop.xlane.xlu1 %4230 }
0x198d   :  { %v4235_v52 = vmul.f32 0.125, %v4231_v42 }
0x198f   :  { %v4237_v60 = vadd.f32 1e-05, %v4235_v52 }
0x1990   :  { %v4234_v53 = vpop.xlane.xlu0 %4233 }
0x1991   :  { %4840 = vrsqrt.f32 %v4237_v60  ;;  %v4236_v54 = vmul.f32 0.125, %v4234_v53 }
0x1993   :  { %v4238_v55 = vadd.f32 1e-05, %v4236_v54 }
0x1995   :  { %4842 = vrsqrt.f32 %v4238_v55 }
0x199b   :  { %v4841_v57 = vpop.eup %4840 }
0x199c   :  { %v4241_v22 = vmul.f32 %v4841_v57, %v4225_v46 }
0x199e   :  { %v4247_v2 = vmul.f32 %v4246_v56, %v4241_v22 }
0x199f   :  { %v4843_v51 = vpop.eup %4842 }
0x19a0   :  { %v4253_v59 = vadd.f32 %v4252_v58, %v4247_v2  ;;  %v4242_v61 = vmul.f32 %v4843_v51, %v4226_v49 }
0x19a2   :  { %v5519_v7 = vsel %vm138_vm0, %v4253_v59, %v4845_v63  ;;  %v4248_v8 = vmul.f32 %v4246_v56, %v4242_v61 }
0x19a3   :  { %4283 = vrot.lane.b32.xlu1 %v5519_v7, %s4998_s21  ;;  %4295 = vrot.lane.b32.xlu0 %v5519_v7, %s5003_s10 }
0x19a4   :  { %v4254_v32 = vadd.f32 %v4252_v58, %v4248_v8 }
0x19a6   :  { %v5527_v33 = vsel %vm138_vm0, %v4254_v32, %v4846_v4 }
0x19a7   :  { %4289 = vrot.lane.b32.xlu1 %v5519_v7, %s5004_s11  ;;  %4392 = vrot.lane.b32.xlu0 %v5519_v7, %s5005_s12 }
0x19ab   :  { %4307 = vrot.lane.b32.xlu0 %v5519_v7, %s5006_s13  ;;  %4291 = vrot.lane.b32.xlu1 %v5527_v33, %s5004_s11 }
0x19af   :  { %4313 = vrot.lane.b32.xlu0 %v5519_v7, %s4995_s4  ;;  %4297 = vrot.lane.b32.xlu1 %v5527_v33, %s5003_s10 }
0x19b3   :  { %4319 = vrot.lane.b32.xlu0 %v5519_v7, %s5007_s14  ;;  %4394 = vrot.lane.b32.xlu1 %v5527_v33, %s5005_s12 }
0x19b7   :  { %4398 = vrot.lane.b32.xlu0 %v5519_v7, %s5008_s15  ;;  %4309 = vrot.lane.b32.xlu1 %v5527_v33, %s5006_s13 }
0x19bb   :  { %4331 = vrot.lane.b32.xlu0 %v5519_v7, %s5009_s0  ;;  %4315 = vrot.lane.b32.xlu1 %v5527_v33, %s4995_s4  ;;  %s4957_s4 = scalar_lea.vmem %s4483_s22, 256 }
0x19bc   :  { %p4958_p12 = scmp.ne.s32.totalorder %s4483_s22, %s4957_s4  ;;  %p4963_p0 = scmp.lt.s32.totalorder %s4957_s4, %s4957_s4 }
0x19be   :  { %p4964_p1 = por %p4963_p0, %p4962_p13 }
0x19bf   :  { %4337 = vrot.lane.b32.xlu0 %v5519_v7, %s5010_s16  ;;  %4321 = vrot.lane.b32.xlu1 %v5527_v33, %s5007_s14 }
0x19c0   :  { %p4965_p2 = pnand %p4964_p1, %p4958_p12 }
0x19c3   :  { %4343 = vrot.lane.b32.xlu0 %v5519_v7, %s4997_s3  ;;  %4400 = vrot.lane.b32.xlu1 %v5527_v33, %s5008_s15 }
0x19c7   :  { %4404 = vrot.lane.b32.xlu0 %v5519_v7, %s5011_s1  ;;  %4333 = vrot.lane.b32.xlu1 %v5527_v33, %s5009_s0 }
0x19cb   :  { %4339 = vrot.lane.b32.xlu1 %v5527_v33, %s5010_s16  ;;  %4285 = vrot.lane.b32.xlu0 %v5527_v33, %s4998_s21 }
0x19cf   :  { %4345 = vrot.lane.b32.xlu1 %v5527_v33, %s4997_s3  ;;  %4410 = vrot.lane.b32.xlu0 %v5519_v7, %s5012_s17 }
0x19d3   :  { %4406 = vrot.lane.b32.xlu1 %v5527_v33, %s5011_s1  ;;  %4416 = vrot.lane.b32.xlu0 %v5519_v7, %s5013_s18 }
0x19d7   :  { %4412 = vrot.lane.b32.xlu1 %v5527_v33, %s5012_s17  ;;  %4422 = vrot.lane.b32.xlu0 %v5519_v7, %s5014_s19 }
0x19db   :  { %4418 = vrot.lane.b32.xlu1 %v5527_v33, %s5013_s18  ;;  %4428 = vrot.lane.b32.xlu0 %v5519_v7, %s4996_s29 }
0x19df   :  { %4424 = vrot.lane.b32.xlu1 %v5527_v33, %s5014_s19  ;;  %4259 = vrot.lane.b32.xlu0 %v5519_v7, %s5015_s20 }
0x19e3   :  { %4430 = vrot.lane.b32.xlu1 %v5527_v33, %s4996_s29  ;;  %4265 = vrot.lane.b32.xlu0 %v5519_v7, %s5016_s23 }
0x19e7   :  { %4261 = vrot.lane.b32.xlu1 %v5527_v33, %s5015_s20  ;;  %4271 = vrot.lane.b32.xlu0 %v5519_v7, %s5017_s24 }
0x19eb   :  { %4267 = vrot.lane.b32.xlu1 %v5527_v33, %s5016_s23  ;;  %4277 = vrot.lane.b32.xlu0 %v5519_v7, %s5018_s25 }
0x19ef   :  { %4273 = vrot.lane.b32.xlu1 %v5527_v33, %s5017_s24  ;;  %4301 = vrot.lane.b32.xlu0 %v5519_v7, %s5019_s26 }
0x19f3   :  { %4279 = vrot.lane.b32.xlu1 %v5527_v33, %s5018_s25  ;;  %4325 = vrot.lane.b32.xlu0 %v5519_v7, %s5020_s27 }
0x19f7   :  { %4303 = vrot.lane.b32.xlu1 %v5527_v33, %s5019_s26 }
0x19fb   :  { %4327 = vrot.lane.b32.xlu1 %v5527_v33, %s5020_s27 }
0x1a15   :  { %v5576_v28 = vpop.permute.xlu1 %4283  ;;  %v5578_v16 = vpop.permute.xlu0 %4295 }
0x1a19   :  { %v5580_v5 = vpop.permute.xlu1 %4289  ;;  %v4393_v9 = vpop.permute.xlu0 %4392 }
0x1a1a   :  { %v4434_v18 = vsel %vm4349_vm6, %v5576_v28, %v5580_v5 }
0x1a1b   :  { %v4436_v19 = vsel %vm4352_vm7, %v4434_v18, %v5578_v16 }
0x1a1c   :  { %v4438_v12 = vsel %vm4355_vm8, %v4436_v19, %v4393_v9 }
0x1a1d   :  { %v5582_v14 = vpop.permute.xlu1 %4291  ;;  %v5584_v10 = vpop.permute.xlu0 %4307 }
0x1a1e   :  { %v4440_v35 = vsel %vm226_vm1, %v4438_v12, %v5584_v10 }
0x1a21   :  { %v5586_v40 = vpop.permute.xlu1 %4297  ;;  %v5588_v13 = vpop.permute.xlu0 %4313 }
0x1a22   :  { %v4442_v41 = vsel %vm4360_vm9, %v4440_v35, %v5588_v13 }
0x1a25   :  { %v4395_v15 = vpop.permute.xlu1 %4394  ;;  %v5590_v17 = vpop.permute.xlu0 %4319 }
0x1a26   :  { %v4444_v46 = vsel %vm4363_vm10, %v4442_v41, %v5590_v17 }
0x1a29   :  { %v5592_v1 = vpop.permute.xlu1 %4309  ;;  %v4399_v20 = vpop.permute.xlu0 %4398 }
0x1a2a   :  { %v4446_v48 = vsel %vm4366_vm11, %v4444_v46, %v4399_v20 }
0x1a2d   :  { %v5594_v30 = vpop.permute.xlu1 %4315  ;;  %v5596_v6 = vpop.permute.xlu0 %4331 }
0x1a2e   :  { %v4448_v49 = vsel %vm138_vm0, %v4446_v48, %v5596_v6 }
0x1a31   :  { %v5598_v3 = vpop.permute.xlu1 %4321  ;;  %v5600_v23 = vpop.permute.xlu0 %4337 }
0x1a32   :  { %v4450_v50 = vsel %vm4371_vm12, %v4448_v49, %v5600_v23 }
0x1a35   :  { %v4401_v25 = vpop.permute.xlu1 %4400  ;;  %v5602_v29 = vpop.permute.xlu0 %4343 }
0x1a36   :  { %v4452_v45 = vsel %vm4374_vm13, %v4450_v50, %v5602_v29 }
0x1a39   :  { %v5604_v26 = vpop.permute.xlu1 %4333  ;;  %v4405_v21 = vpop.permute.xlu0 %4404 }
0x1a3a   :  { %v4454_v60 = vsel %vm4377_vm14, %v4452_v45, %v4405_v21 }
0x1a3d   :  { %v5611_v11 = vpop.permute.xlu1 %4339  ;;  %v5613_v24 = vpop.permute.xlu0 %4285 }
0x1a3e   :  { %v4435_v31 = vsel %vm4349_vm6, %v5613_v24, %v5582_v14 }
0x1a3f   :  { %v4437_v34 = vsel %vm4352_vm7, %v4435_v31, %v5586_v40 }
0x1a40   :  { %v4439_v0 = vsel %vm4355_vm8, %v4437_v34, %v4395_v15 }
0x1a41   :  { %v4441_v27 = vsel %vm226_vm1, %v4439_v0, %v5592_v1  ;;  %v5624_v37 = vpop.permute.xlu1 %4345  ;;  %v4411_v38 = vpop.permute.xlu0 %4410 }
0x1a42   :  { %v4443_v47 = vsel %vm4360_vm9, %v4441_v27, %v5594_v30  ;;  %v4456_v54 = vsel %vm4380_vm15, %v4454_v60, %v4411_v38 }
0x1a43   :  { %v4445_v39 = vsel %vm4363_vm10, %v4443_v47, %v5598_v3 }
0x1a44   :  { %v4447_v43 = vsel %vm4366_vm11, %v4445_v39, %v4401_v25 }
0x1a45   :  { %v4407_v62 = vpop.permute.xlu1 %4406  ;;  %v4417_v36 = vpop.permute.xlu0 %4416  ;;  %v4449_v44 = vsel %vm138_vm0, %v4447_v43, %v5604_v26 }
0x1a46   :  { %v4451_v53 = vsel %vm4371_vm12, %v4449_v44, %v5611_v11  ;;  %v4458_v55 = vsel %vm4383_vm2, %v4456_v54, %v4417_v36 }
0x1a47   :  { %v4453_v56 = vsel %vm4374_vm13, %v4451_v53, %v5624_v37 }
0x1a48   :  { %v4455_v51 = vsel %vm4377_vm14, %v4453_v56, %v4407_v62 }
0x1a49   :  { %v4413_v42 = vpop.permute.xlu1 %4412  ;;  %v4423_v52 = vpop.permute.xlu0 %4422 }
0x1a4a   :  { %v4460_v57 = vsel %vm4386_vm3, %v4458_v55, %v4423_v52  ;;  %v4457_v63 = vsel %vm4380_vm15, %v4455_v51, %v4413_v42 }
0x1a4d   :  { %v4419_v58 = vpop.permute.xlu1 %4418  ;;  %v4429_v22 = vpop.permute.xlu0 %4428 }
0x1a4e   :  { %v4462_v2 = vsel %vm4389_vm5, %v4460_v57, %v4429_v22  ;;  %v4459_v8 = vsel %vm4383_vm2, %v4457_v63, %v4419_v58 }
0x1a4f   :  { %4466 = vrot.lane.b32.xlu0 %v4462_v2, %s5021_s28 }
0x1a51   :  { %v4425_v59 = vpop.permute.xlu1 %4424  ;;  %v4260_v61 = vpop.permute.xlu0 %4259 }
0x1a52   :  { %v4461_v32 = vsel %vm4386_vm3, %v4459_v8, %v4425_v59  ;;  %v4350_v21 = vsel %vm4349_vm6, %v5519_v7, %v4260_v61 }
0x1a55   :  { %v4431_v4 = vpop.permute.xlu1 %4430  ;;  %v4266_v9 = vpop.permute.xlu0 %4265 }
0x1a56   :  { %v4463_v15 = vsel %vm4389_vm5, %v4461_v32, %v4431_v4  ;;  %v4353_v18 = vsel %vm4352_vm7, %v4350_v21, %v4266_v9 }
0x1a57   :  { %4468 = vrot.lane.b32.xlu1 %v4463_v15, %s5021_s28 }
0x1a59   :  { %v4262_v20 = vpop.permute.xlu1 %4261  ;;  %v4272_v25 = vpop.permute.xlu0 %4271 }
0x1a5a   :  { %v4356_v19 = vsel %vm4355_vm8, %v4353_v18, %v4272_v25  ;;  %v4351_v39 = vsel %vm4349_vm6, %v5527_v33, %v4262_v20 }
0x1a5d   :  { %v4268_v31 = vpop.permute.xlu1 %4267  ;;  %v4278_v34 = vpop.permute.xlu0 %4277 }
0x1a5e   :  { %v4358_v12 = vsel %vm226_vm1, %v4356_v19, %v4278_v34  ;;  %v4354_v43 = vsel %vm4352_vm7, %v4351_v39, %v4268_v31 }
0x1a5f   :  { %v4361_v0 = vsel %vm4360_vm9, %v4358_v12, %v5576_v28 }
0x1a60   :  { %v4364_v27 = vsel %vm4363_vm10, %v4361_v0, %v5580_v5 }
0x1a61   :  { %v4274_v38 = vpop.permute.xlu1 %4273  ;;  %v4367_v47 = vsel %vm4366_vm11, %v4364_v27, %v5578_v16  ;;  %v4302_v35 = vpop.permute.xlu0 %4301 }
0x1a62   :  { %v4369_v7 = vsel %vm138_vm0, %v4367_v47, %v4302_v35  ;;  %v4357_v5 = vsel %vm4355_vm8, %v4354_v43, %v4274_v38 }
0x1a63   :  { %v4372_v41 = vsel %vm4371_vm12, %v4369_v7, %v5584_v10 }
0x1a64   :  { %v4375_v28 = vsel %vm4374_vm13, %v4372_v41, %v5588_v13 }
0x1a65   :  { %v4280_v46 = vpop.permute.xlu1 %4279  ;;  %v4378_v16 = vsel %vm4377_vm14, %v4375_v28, %v5590_v17  ;;  %v4326_v62 = vpop.permute.xlu0 %4325 }
0x1a66   :  { %v4359_v36 = vsel %vm226_vm1, %v4357_v5, %v4280_v46  ;;  %v4381_v48 = vsel %vm4380_vm15, %v4378_v16, %v4326_v62 }
0x1a67   :  { %v4362_v33 = vsel %vm4360_vm9, %v4359_v36, %v5613_v24  ;;  %v4384_v10 = vsel %vm4383_vm2, %v4381_v48, %v5596_v6 }
0x1a68   :  { %v4365_v13 = vsel %vm4363_vm10, %v4362_v33, %v5582_v14  ;;  %v4387_v49 = vsel %vm4386_vm3, %v4384_v10, %v5600_v23 }
0x1a69   :  { %v4304_v44 = vpop.permute.xlu1 %4303  ;;  %v4368_v17 = vsel %vm4366_vm11, %v4365_v13, %v5586_v40  ;;  %v4390_v50 = vsel %vm4389_vm5, %v4387_v49, %v5602_v29 }
0x1a6a   :  { %v4370_v45 = vsel %vm138_vm0, %v4368_v17, %v4304_v44  ;;  %vm4474_vm0 = vcmask 261120  }
0x1a6b   :  { %v4373_v24 = vsel %vm4371_vm12, %v4370_v45, %v5592_v1 }
0x1a6c   :  { %v4376_v6 = vsel %vm4374_vm13, %v4373_v24, %v5594_v30 }
0x1a6d   :  { %v4328_v42 = vpop.permute.xlu1 %4327  ;;  %v4379_v14 = vsel %vm4377_vm14, %v4376_v6, %v5598_v3 }
0x1a6e   :  { %v4382_v23 = vsel %vm4380_vm15, %v4379_v14, %v4328_v42 }
0x1a6f   :  { %v4385_v40 = vsel %vm4383_vm2, %v4382_v23, %v5604_v26 }
0x1a70   :  { %v4388_v29 = vsel %vm4386_vm3, %v4385_v40, %v5611_v11 }
0x1a71   :  { %v4391_v52 = vsel %vm4389_vm5, %v4388_v29, %v5624_v37 }
0x1ac1   :  { %v4467_v1 = vpop.permute.xlu0 %4466 }
0x1ac2   :  { %v4472_v60 = vsel %vm314_vm4, %v4390_v50, %v4467_v1 }
0x1ac3   :  { %4475 = vst.msk [vmem:[#allocation11] sm:$0xff] %vm4474_vm0, %v4472_v60 }
0x1ac9   :  { %v4469_v30 = vpop.permute.xlu1 %4468 }
0x1aca   :  { %v4473_v3 = vsel %vm314_vm4, %v4391_v52, %v4469_v30 }
0x1acb   :  { %4476 = vst.msk [vmem:[#allocation11 + $0x8] sm:$0xff] %vm4474_vm0, %v4473_v3 }
0x1acc   :  { %4968 = shalt.err (!%p4965_p2)
}
0x1acd   :  { %s4969_s21 = scalar_lea.hbm %s5732_s5, 256 }
0x1ace   :  { %p4970_p3 = scmp.ne.s32.totalorder %s5732_s5, %s4969_s21  ;;  %p4973_p4 = scmp.lt.u32.totalorder %s4969_s21, %s5732_s5 }
0x1ad0   :  { %p4975_p5 = pnand %p4973_p4, %p4970_p3 }
0x1ad2   :  { %4978 = shalt.err (!%p4975_p5)
}
0x1ad3   :  { %4488 = dma.vmem_to_hbm [thread:$0]  %s4483_s22, 256, %s5732_s5, [#allocation4], %s4989_s30, %s4989_s30, %s4990_s6  }
0x1ad4   :  { %4985 = dma.done.wait [#allocation4], 256  }
0x1ad5   :  { %4986 = vsyncadd [#allocation4], 4294967040 }
0x1ad6   :  { %4492 = vsyncpa [#allocation3], 1 }
0x1ad7   :  { %4493 = vsyncpa [#allocation6], 1 }
0x1ad8   :  { %4494 = vsyncpa [#allocation9], 1 }
0x1ad9   :  { %4495 = vsyncpa [#allocation4], 1 }

</bundles_post_ra>
